<compile_context>
chip_gen: v7x
topology: tpu7x:2x2x1
jax: 0.10.0
libtpu: 0.0.40
codegen_flags: <defaults>
</compile_context>

<pallas_src>
import math

import jax
import jax.numpy as jnp
from jax.experimental import pallas as pl
from jax.experimental.pallas import tpu as pltpu

LANE = 128
_VMEM_LIMIT = 32 * 1024 * 1024  # safe on v5e (128 MiB phys) and v7x (64 MiB phys)


def _round_up(x, m):
    return ((x + m - 1) // m) * m


# ---------------------------------------------------------------------------
# Kernel 1: per-edge transform   t = leaky_relu(x_edge @ W1p)
# ---------------------------------------------------------------------------
def _edge_kernel(x_ref, w1_ref, t_ref):
    t = jnp.dot(x_ref[...], w1_ref[...], preferred_element_type=jnp.float32)
    t = jnp.where(t > 0, t, 0.01 * t)          # torch leaky_relu default slope
    t_ref[...] = t.astype(t_ref.dtype)


def qconv_edge(x_edge, w1p, *, e_tile):
    E_pad, P = x_edge.shape
    IP = w1p.shape[1]
    return pl.pallas_call(
        _edge_kernel,
        out_shape=jax.ShapeDtypeStruct((E_pad, IP), jnp.bfloat16),
        grid_spec=pltpu.PrefetchScalarGridSpec(
            num_scalar_prefetch=0,
            grid=(E_pad // e_tile,),
            in_specs=[
                pl.BlockSpec((e_tile, P), lambda k: (k, 0)),   # packed edge feats
                pl.BlockSpec((P, IP), lambda k: (0, 0)),       # W1 (padded, pre-T)
            ],
            out_specs=pl.BlockSpec((e_tile, IP), lambda k: (k, 0)),
        ),
        compiler_params=pltpu.CompilerParams(
            dimension_semantics=("parallel",),
            vmem_limit_bytes=_VMEM_LIMIT,
        ),
    )(x_edge, w1p)


# ---------------------------------------------------------------------------
# Kernel 2: scatter-mean over incoming edges + linear2 + bias + relu
# ---------------------------------------------------------------------------
def _node_kernel(dst_ref, t_ref, h_ref, invdeg_ref, w2a_ref, w2b_ref, b2_ref,
                 out_ref, acc_ref):
    i = pl.program_id(0)                # node tile
    k = pl.program_id(1)                # edge tile (reduction axis, last)
    n_tile = acc_ref.shape[0]
    e_tile = t_ref.shape[0]

    @pl.when(k == 0)
    def _():
        acc_ref[...] = jnp.zeros_like(acc_ref)

    # Build the [n_tile, e_tile] one-hot block of the aggregation matrix
    # in-register from dst ids (no dense [N, E] matrix ever touches HBM).
    node_ids = jax.lax.broadcasted_iota(jnp.int32, (n_tile, e_tile), 0) + i * n_tile
    onehot = jnp.where(node_ids == dst_ref[...], 1.0, 0.0).astype(jnp.bfloat16)
    acc_ref[...] += jnp.dot(onehot, t_ref[...], preferred_element_type=jnp.float32)

    @pl.when(k == pl.num_programs(1) - 1)
    def _():
        h_n = acc_ref[...] * invdeg_ref[...]          # mean (0 for deg == 0)
        h_lin = (
            jnp.dot(h_ref[...], w2a_ref[...], preferred_element_type=jnp.float32)
            + jnp.dot(h_n.astype(jnp.bfloat16), w2b_ref[...],
                      preferred_element_type=jnp.float32)
            + b2_ref[...]
        )
        out_ref[...] = jnp.maximum(h_lin, 0.0).astype(out_ref.dtype)


def qconv_node(dst2d, t, h_pad, inv_deg, w2a, w2b, b2p, *, n_tile, e_tile):
    N_pad, P = h_pad.shape
    E_pad, IP = t.shape
    OP = w2a.shape[1]
    return pl.pallas_call(
        _node_kernel,
        out_shape=jax.ShapeDtypeStruct((N_pad, OP), jnp.bfloat16),
        grid_spec=pltpu.PrefetchScalarGridSpec(
            num_scalar_prefetch=0,
            grid=(N_pad // n_tile, E_pad // e_tile),
            in_specs=[
                pl.BlockSpec((1, e_tile), lambda i, k: (0, k)),    # dst ids
                pl.BlockSpec((e_tile, IP), lambda i, k: (k, 0)),   # t (per-edge)
                pl.BlockSpec((n_tile, P), lambda i, k: (i, 0)),    # h (node feats)
                pl.BlockSpec((n_tile, 1), lambda i, k: (i, 0)),    # 1 / deg
                pl.BlockSpec((P, OP), lambda i, k: (0, 0)),        # W2a
                pl.BlockSpec((IP, OP), lambda i, k: (0, 0)),       # W2b
                pl.BlockSpec((1, OP), lambda i, k: (0, 0)),        # b2
            ],
            out_specs=pl.BlockSpec((n_tile, OP), lambda i, k: (i, 0)),
            scratch_shapes=[pltpu.VMEM((n_tile, IP), jnp.float32)],
        ),
        compiler_params=pltpu.CompilerParams(
            dimension_semantics=("parallel", "arbitrary"),
            vmem_limit_bytes=_VMEM_LIMIT,
        ),
    )(dst2d, t, h_pad, inv_deg, w2a, w2b, b2p)


# ---------------------------------------------------------------------------
# Wrapper / glue
# ---------------------------------------------------------------------------
def _prep_layer_weights(w1, w2, b2, f_in, P, IP, OP):
    """Pre-transpose, split and zero-pad torch-layout weights to 128 lanes."""
    inter = w1.shape[0]
    out = w2.shape[0]
    w1p = jnp.zeros((P, IP), jnp.float32)
    w1p = w1p.at[:f_in, :inter].set(w1[:, :f_in].T)            # src-feature part
    w1p = w1p.at[f_in:f_in + 3, :inter].set(w1[:, f_in:].T)    # w_edge part
    w2a = jnp.zeros((P, OP), jnp.float32).at[:f_in, :out].set(w2[:, :f_in].T)
    w2b = jnp.zeros((IP, OP), jnp.float32).at[:inter, :out].set(w2[:, f_in:].T)
    b2p = jnp.zeros((1, OP), jnp.float32).at[0, :out].set(b2)
    return (w1p.astype(jnp.bfloat16), w2a.astype(jnp.bfloat16),
            w2b.astype(jnp.bfloat16), b2p)


def qgnn_forward(params, gate_type, src, dst, w_edge, *, n_tile=128, e_tile=256):
    N = gate_type.shape[0]
    E = src.shape[0]
    convs = params["convs"]
    in_feats = params["embedding"].shape[1]
    out_feats = convs[-1][1].shape[0]

    feat_dims = [in_feats] + [w2.shape[0] for (_, w2, _) in convs]
    inter_max = max(w1.shape[0] for (w1, _, _) in convs)
    PAD = _round_up(max(max(feat_dims) + 3, inter_max, out_feats, LANE), LANE)
    P = IP = OP = PAD

    N_pad = _round_up(N, n_tile)
    E_pad = _round_up(E, e_tile)

    # Node features: zero-padded, lane-dense bf16 slab (columns >= F_in are 0).
    h0 = params["embedding"][gate_type]                         # [N, in_feats]
    h_pad = jnp.zeros((N_pad, P), jnp.bfloat16)
    h_pad = h_pad.at[:N, :in_feats].set(h0.astype(jnp.bfloat16))

    # Aggregation indices shared by all layers (padded edges get dst = -1 so
    # they never match a node row; padded nodes get inv_deg = 0 -> h_N = 0).
    deg = jnp.zeros((N,), jnp.float32).at[dst].add(1.0)
    inv_deg = jnp.zeros((N_pad, 1), jnp.float32)
    inv_deg = inv_deg.at[:N, 0].set(1.0 / jnp.maximum(deg, 1.0))
    dst2d = jnp.full((1, E_pad), -1, jnp.int32).at[0, :E].set(dst.astype(jnp.int32))
    w_edge_bf = w_edge.astype(jnp.bfloat16)

    f_in = in_feats
    for (w1, w2, b2) in convs:
        w1p, w2a, w2b, b2p = _prep_layer_weights(w1, w2, b2, f_in, P, IP, OP)
        # TODO(synk): move this row gather into the edge kernel (manual DMA
        # gather with scalar-prefetched src ids) to avoid the [E, P] HBM
        # round-trip per layer.
        hs = h_pad[src]                                          # [E, P] bf16
        # Pack cat([h[src], w_edge]) into one 128-lane slab -> single matmul.
        x_edge = jnp.zeros((E_pad, P), jnp.bfloat16)
        x_edge = x_edge.at[:E, :f_in].set(hs[:, :f_in])
        x_edge = x_edge.at[:E, f_in:f_in + 3].set(w_edge_bf)

        t = qconv_edge(x_edge, w1p, e_tile=e_tile)               # [E_pad, IP]
        h_pad = qconv_node(dst2d, t, h_pad, inv_deg, w2a, w2b, b2p,
                           n_tile=n_tile, e_tile=e_tile)         # [N_pad, OP]
        f_in = w2.shape[0]

    return h_pad[:N, :out_feats].astype(jnp.float32)


# ---------------------------------------------------------------------------
# Parameter init (matches the PyTorch module's reset_parameters)
# ---------------------------------------------------------------------------
def xavier_normal(key, shape, gain):
    fan_out, fan_in = shape  # torch Linear weight is [out_features, in_features]
    std = gain * math.sqrt(2.0 / (fan_in + fan_out))
    return std * jax.random.normal(key, shape, jnp.float32)


def init_qgnn_params(key, num_layers, in_feats, h_feats, inter_dim):
    gain = math.sqrt(2.0)  # nn.init.calculate_gain('relu')
    keys = jax.random.split(key, 1 + 3 * num_layers)
    params = {"embedding": jax.random.normal(keys[0], (in_feats, in_feats),
                                             jnp.float32)}
    convs = []
    f_in = in_feats
    for i in range(num_layers):
        k1, k2, k3 = keys[1 + 3 * i:4 + 3 * i]
        w1 = xavier_normal(k1, (inter_dim, f_in + 3), gain)
        w2 = xavier_normal(k2, (h_feats, f_in + inter_dim), gain)
        bound = 1.0 / math.sqrt(f_in + inter_dim)  # torch default bias init
        b2 = jax.random.uniform(k3, (h_feats,), jnp.float32, -bound, bound)
        convs.append((w1, w2, b2))
        f_in = h_feats
    params["convs"] = convs
    return params


# ---------------------------------------------------------------------------
# Pure-JAX f32 reference (same math, no Pallas) for a sanity check
# ---------------------------------------------------------------------------
def qgnn_reference(params, gate_type, src, dst, w_edge):
    N = gate_type.shape[0]
    h = params["embedding"][gate_type]
    deg = jnp.zeros((N,), jnp.float32).at[dst].add(1.0)
    for (w1, w2, b2) in params["convs"]:
        m = jnp.concatenate([h[src], w_edge], axis=1)
        t = m @ w1.T
        t = jnp.where(t > 0, t, 0.01 * t)
        s = jnp.zeros((N, t.shape[1]), jnp.float32).at[dst].add(t)
        h_n = s / jnp.maximum(deg, 1.0)[:, None]
        h = jnp.maximum(jnp.concatenate([h, h_n], axis=1) @ w2.T + b2, 0.0)
    return h


if __name__ == "__main__":
    num_layers = 2
    in_feats = 8
    h_feats = 32
    inter_dim = 16
    N = 200    # nodes  (padded to 256 internally -> 2 node tiles)
    E = 1000   # edges  (padded to 1024 internally -> 4 edge tiles)

    root = jax.random.PRNGKey(0)
    kp, kg, ks, kd, ke1, ke2, ke3 = jax.random.split(root, 7)

    params = init_qgnn_params(kp, num_layers, in_feats, h_feats, inter_dim)

    gate_type = jax.random.randint(kg, (N,), 0, in_feats)               # g.ndata['gate_type']
    src = jax.random.randint(ks, (E,), 0, N)                            # edge src node ids
    dst = jax.random.randint(kd, (E,), 0, N)                            # edge dst node ids
    src_idx = jax.random.randint(ke1, (E,), 0, 3).astype(jnp.float32)   # g.edata['src_idx']
    dst_idx = jax.random.randint(ke2, (E,), 0, 3).astype(jnp.float32)   # g.edata['dst_idx']
    reversed_ = jax.random.randint(ke3, (E,), 0, 2).astype(jnp.float32)  # g.edata['reversed']
    w_edge = jnp.stack([src_idx, dst_idx, reversed_], axis=1)           # [E, 3]

    fwd = jax.jit(qgnn_forward)
    out = fwd(params, gate_type, src, dst, w_edge)
    jax.block_until_ready(out)

    assert out.shape == (N, h_feats) and out.dtype == jnp.float32
    assert bool(jnp.all(jnp.isfinite(out)))

    # Sanity check vs pure-JAX f32 reference (bf16 MXU operands -> loose tol).
    ref = qgnn_reference(params, gate_type, src, dst, w_edge)
    assert jnp.allclose(out, ref, rtol=2e-1, atol=2e-1), (
        f"max abs err = {float(jnp.max(jnp.abs(out - ref)))}")

    print("KERNEL_OK")
</pallas_src>

<mosaic_0001>
module attributes {stable_mosaic.version = 11 : i64} {
  func.func @_edge_kernel(%arg0: i32, %arg1: memref<256x128xbf16, #tpu.memory_space<vmem>>, %arg2: memref<128x128xbf16, #tpu.memory_space<vmem>>, %arg3: memref<256x128xbf16, #tpu.memory_space<vmem>>) attributes {dimension_semantics = [#tpu.dimension_semantics<parallel>], iteration_bounds = array<i64: 4>, scalar_prefetch = 0 : i64, scratch_operands = 0 : i64, tpu.core_type = #tpu.core_type<tc>, window_params = [{transform_indices = @transform_0, window_bounds = array<i64: 256, 128>}, {pipeline_mode = #tpu.pipeline_mode<synchronous>, transform_indices = @transform_1, window_bounds = array<i64: 128, 128>}, {transform_indices = @transform_2, window_bounds = array<i64: 256, 128>}]} {
    %c0 = arith.constant 0 : index
    %c0_0 = arith.constant 0 : index
    %0 = vector.load %arg1[%c0, %c0_0] : memref<256x128xbf16, #tpu.memory_space<vmem>>, vector<256x128xbf16>
    %c0_1 = arith.constant 0 : index
    %c0_2 = arith.constant 0 : index
    %1 = vector.load %arg2[%c0_1, %c0_2] : memref<128x128xbf16, #tpu.memory_space<vmem>>, vector<128x128xbf16>
    %cst = arith.constant dense<0.000000e+00> : vector<256x128xf32>
    %2 = tpu.matmul %0, %1, %cst {dimension_numbers = #tpu.dot_dimension_numbers<[1], [0], [0], [1], [0, 0, 1, 1], [], []>} : vector<256x128xbf16>, vector<128x128xbf16>, vector<256x128xf32> -> vector<256x128xf32>
    %cst_3 = arith.constant 0.000000e+00 : f32
    %3 = vector.broadcast %cst_3 : f32 to vector<256x128xf32>
    %4 = arith.cmpf ogt, %2, %3 : vector<256x128xf32>
    %cst_4 = arith.constant 0.00999999977 : f32
    %5 = vector.broadcast %cst_4 : f32 to vector<256x128xf32>
    %6 = arith.mulf %5, %2 : vector<256x128xf32>
    %7 = arith.select %4, %2, %6 : vector<256x128xi1>, vector<256x128xf32>
    %8 = arith.truncf %7 : vector<256x128xf32> to vector<256x128xbf16>
    %c0_5 = arith.constant 0 : index
    %c0_6 = arith.constant 0 : index
    %9 = vector.load %arg3[%c0_5, %c0_6] : memref<256x128xbf16, #tpu.memory_space<vmem>>, vector<256x128xbf16>
    tpu.vector_store %arg3[%c0_5, %c0_6], %8 {strides = array<i32>} : memref<256x128xbf16, #tpu.memory_space<vmem>>, vector<256x128xbf16>,
    return
  }
  func.func @transform_0(%arg0: i32) -> (i32, i32) {
    %c0_i32 = arith.constant 0 : i32
    %c0_i32_0 = arith.constant 0 : i32
    return %arg0, %c0_i32 : i32, i32
  }
  func.func @transform_1(%arg0: i32) -> (i32, i32) {
    %c0_i32 = arith.constant 0 : i32
    %c0_i32_0 = arith.constant 0 : i32
    %c0_i32_1 = arith.constant 0 : i32
    return %c0_i32, %c0_i32_0 : i32, i32
  }
  func.func @transform_2(%arg0: i32) -> (i32, i32) {
    %c0_i32 = arith.constant 0 : i32
    %c0_i32_0 = arith.constant 0 : i32
    return %arg0, %c0_i32 : i32, i32
  }
}

module attributes {stable_mosaic.version = 11 : i64} {
  func.func @_node_kernel(%arg0: i32, %arg1: i32, %arg2: memref<1x256xi32, #tpu.memory_space<vmem>>, %arg3: memref<256x128xbf16, #tpu.memory_space<vmem>>, %arg4: memref<128x128xbf16, #tpu.memory_space<vmem>>, %arg5: memref<128x1xf32, #tpu.memory_space<vmem>>, %arg6: memref<128x128xbf16, #tpu.memory_space<vmem>>, %arg7: memref<128x128xbf16, #tpu.memory_space<vmem>>, %arg8: memref<1x128xf32, #tpu.memory_space<vmem>>, %arg9: memref<128x128xbf16, #tpu.memory_space<vmem>>, %arg10: memref<128x128xf32, #tpu.memory_space<vmem>>) attributes {dimension_semantics = [#tpu.dimension_semantics<parallel>, #tpu.dimension_semantics<arbitrary>], iteration_bounds = array<i64: 2, 4>, scalar_prefetch = 0 : i64, scratch_operands = 1 : i64, tpu.core_type = #tpu.core_type<tc>, window_params = [{transform_indices = @transform_0, window_bounds = array<i64: 1, 256>}, {transform_indices = @transform_1, window_bounds = array<i64: 256, 128>}, {transform_indices = @transform_2, window_bounds = array<i64: 128, 128>}, {transform_indices = @transform_3, window_bounds = array<i64: 128, 1>}, {pipeline_mode = #tpu.pipeline_mode<synchronous>, transform_indices = @transform_4, window_bounds = array<i64: 128, 128>}, {pipeline_mode = #tpu.pipeline_mode<synchronous>, transform_indices = @transform_5, window_bounds = array<i64: 128, 128>}, {pipeline_mode = #tpu.pipeline_mode<synchronous>, transform_indices = @transform_6, window_bounds = array<i64: 1, 128>}, {transform_indices = @transform_7, window_bounds = array<i64: 128, 128>}]} {
    %c0_i32 = arith.constant 0 : i32
    %0 = arith.cmpi eq, %arg1, %c0_i32 : i32
    %1 = arith.extui %0 : i1 to i32
    %c0_i32_0 = arith.constant 0 : i32
    %2 = arith.cmpi ne, %1, %c0_i32_0 : i32
    scf.if %2 {
      %cst_11 = arith.constant 0.000000e+00 : f32
      %22 = vector.broadcast %cst_11 : f32 to vector<128x128xf32>
      %c0_12 = arith.constant 0 : index
      %c0_13 = arith.constant 0 : index
      %23 = vector.load %arg10[%c0_12, %c0_13] : memref<128x128xf32, #tpu.memory_space<vmem>>, vector<128x128xf32>
      tpu.vector_store %arg10[%c0_12, %c0_13], %22 {strides = array<i32>} : memref<128x128xf32, #tpu.memory_space<vmem>>, vector<128x128xf32>,
    } else {
    }
    %3 = tpu.iota {dimensions = array<i32: 0>} : vector<128x256xi32>
    %c128_i32 = arith.constant 128 : i32
    %4 = arith.muli %arg0, %c128_i32 : i32
    %5 = vector.broadcast %4 : i32 to vector<128x256xi32>
    %6 = arith.addi %3, %5 : vector<128x256xi32>
    %c0 = arith.constant 0 : index
    %c0_1 = arith.constant 0 : index
    %7 = vector.load %arg2[%c0, %c0_1] : memref<1x256xi32, #tpu.memory_space<vmem>>, vector<1x256xi32>
    %8 = vector.broadcast %7 : vector<1x256xi32> to vector<128x256xi32>
    %9 = arith.cmpi eq, %6, %8 : vector<128x256xi32>
    %cst = arith.constant 1.000000e+00 : f32
    %cst_2 = arith.constant 0.000000e+00 : f32
    %10 = vector.broadcast %cst : f32 to vector<128x256xf32>
    %11 = vector.broadcast %cst_2 : f32 to vector<128x256xf32>
    %12 = arith.select %9, %10, %11 : vector<128x256xi1>, vector<128x256xf32>
    %13 = arith.truncf %12 : vector<128x256xf32> to vector<128x256xbf16>
    %c0_3 = arith.constant 0 : index
    %c0_4 = arith.constant 0 : index
    %14 = vector.load %arg10[%c0_3, %c0_4] : memref<128x128xf32, #tpu.memory_space<vmem>>, vector<128x128xf32>
    %c0_5 = arith.constant 0 : index
    %c0_6 = arith.constant 0 : index
    %15 = vector.load %arg3[%c0_5, %c0_6] : memref<256x128xbf16, #tpu.memory_space<vmem>>, vector<256x128xbf16>
    %cst_7 = arith.constant dense<0.000000e+00> : vector<128x128xf32>
    %16 = tpu.matmul %13, %15, %cst_7 {dimension_numbers = #tpu.dot_dimension_numbers<[1], [0], [0], [1], [0, 0, 1, 1], [], []>} : vector<128x256xbf16>, vector<256x128xbf16>, vector<128x128xf32> -> vector<128x128xf32>
    %17 = arith.addf %14, %16 : vector<128x128xf32>
    %c0_8 = arith.constant 0 : index
    %c0_9 = arith.constant 0 : index
    %18 = vector.load %arg10[%c0_8, %c0_9] : memref<128x128xf32, #tpu.memory_space<vmem>>, vector<128x128xf32>
    tpu.vector_store %arg10[%c0_8, %c0_9], %17 {strides = array<i32>} : memref<128x128xf32, #tpu.memory_space<vmem>>, vector<128x128xf32>,
    %c3_i32 = arith.constant 3 : i32
    %19 = arith.cmpi eq, %arg1, %c3_i32 : i32
    %20 = arith.extui %19 : i1 to i32
    %c0_i32_10 = arith.constant 0 : i32
    %21 = arith.cmpi ne, %20, %c0_i32_10 : i32
    scf.if %21 {
      %c0_11 = arith.constant 0 : index
      %c0_12 = arith.constant 0 : index
      %22 = vector.load %arg10[%c0_11, %c0_12] : memref<128x128xf32, #tpu.memory_space<vmem>>, vector<128x128xf32>
      %c0_13 = arith.constant 0 : index
      %c0_14 = arith.constant 0 : index
      %23 = vector.load %arg5[%c0_13, %c0_14] : memref<128x1xf32, #tpu.memory_space<vmem>>, vector<128x1xf32>
      %24 = vector.broadcast %23 : vector<128x1xf32> to vector<128x128xf32>
      %25 = arith.mulf %22, %24 : vector<128x128xf32>
      %c0_15 = arith.constant 0 : index
      %c0_16 = arith.constant 0 : index
      %26 = vector.load %arg4[%c0_15, %c0_16] : memref<128x128xbf16, #tpu.memory_space<vmem>>, vector<128x128xbf16>
      %c0_17 = arith.constant 0 : index
      %c0_18 = arith.constant 0 : index
      %27 = vector.load %arg6[%c0_17, %c0_18] : memref<128x128xbf16, #tpu.memory_space<vmem>>, vector<128x128xbf16>
      %cst_19 = arith.constant dense<0.000000e+00> : vector<128x128xf32>
      %28 = tpu.matmul %26, %27, %cst_19 {dimension_numbers = #tpu.dot_dimension_numbers<[1], [0], [0], [1], [0, 0, 1, 1], [], []>} : vector<128x128xbf16>, vector<128x128xbf16>, vector<128x128xf32> -> vector<128x128xf32>
      %29 = arith.truncf %25 : vector<128x128xf32> to vector<128x128xbf16>
      %c0_20 = arith.constant 0 : index
      %c0_21 = arith.constant 0 : index
      %30 = vector.load %arg7[%c0_20, %c0_21] : memref<128x128xbf16, #tpu.memory_space<vmem>>, vector<128x128xbf16>
      %cst_22 = arith.constant dense<0.000000e+00> : vector<128x128xf32>
      %31 = tpu.matmul %29, %30, %cst_22 {dimension_numbers = #tpu.dot_dimension_numbers<[1], [0], [0], [1], [0, 0, 1, 1], [], []>} : vector<128x128xbf16>, vector<128x128xbf16>, vector<128x128xf32> -> vector<128x128xf32>
      %32 = arith.addf %28, %31 : vector<128x128xf32>
      %c0_23 = arith.constant 0 : index
      %c0_24 = arith.constant 0 : index
      %33 = vector.load %arg8[%c0_23, %c0_24] : memref<1x128xf32, #tpu.memory_space<vmem>>, vector<1x128xf32>
      %34 = vector.broadcast %33 : vector<1x128xf32> to vector<128x128xf32>
      %35 = arith.addf %32, %34 : vector<128x128xf32>
      %cst_25 = arith.constant 0.000000e+00 : f32
      %36 = vector.broadcast %cst_25 : f32 to vector<128x128xf32>
      %37 = arith.maximumf %35, %36 : vector<128x128xf32>
      %38 = arith.truncf %37 : vector<128x128xf32> to vector<128x128xbf16>
      %c0_26 = arith.constant 0 : index
      %c0_27 = arith.constant 0 : index
      %39 = vector.load %arg9[%c0_26, %c0_27] : memref<128x128xbf16, #tpu.memory_space<vmem>>, vector<128x128xbf16>
      tpu.vector_store %arg9[%c0_26, %c0_27], %38 {strides = array<i32>} : memref<128x128xbf16, #tpu.memory_space<vmem>>, vector<128x128xbf16>,
    } else {
    }
    return
  }
  func.func @transform_0(%arg0: i32, %arg1: i32) -> (i32, i32) {
    %c0_i32 = arith.constant 0 : i32
    %c0_i32_0 = arith.constant 0 : i32
    return %c0_i32, %arg1 : i32, i32
  }
  func.func @transform_1(%arg0: i32, %arg1: i32) -> (i32, i32) {
    %c0_i32 = arith.constant 0 : i32
    %c0_i32_0 = arith.constant 0 : i32
    return %arg1, %c0_i32 : i32, i32
  }
  func.func @transform_2(%arg0: i32, %arg1: i32) -> (i32, i32) {
    %c0_i32 = arith.constant 0 : i32
    %c0_i32_0 = arith.constant 0 : i32
    return %arg0, %c0_i32 : i32, i32
  }
  func.func @transform_3(%arg0: i32, %arg1: i32) -> (i32, i32) {
    %c0_i32 = arith.constant 0 : i32
    %c0_i32_0 = arith.constant 0 : i32
    return %arg0, %c0_i32 : i32, i32
  }
  func.func @transform_4(%arg0: i32, %arg1: i32) -> (i32, i32) {
    %c0_i32 = arith.constant 0 : i32
    %c0_i32_0 = arith.constant 0 : i32
    %c0_i32_1 = arith.constant 0 : i32
    return %c0_i32, %c0_i32_0 : i32, i32
  }
  func.func @transform_5(%arg0: i32, %arg1: i32) -> (i32, i32) {
    %c0_i32 = arith.constant 0 : i32
    %c0_i32_0 = arith.constant 0 : i32
    %c0_i32_1 = arith.constant 0 : i32
    return %c0_i32, %c0_i32_0 : i32, i32
  }
  func.func @transform_6(%arg0: i32, %arg1: i32) -> (i32, i32) {
    %c0_i32 = arith.constant 0 : i32
    %c0_i32_0 = arith.constant 0 : i32
    %c0_i32_1 = arith.constant 0 : i32
    return %c0_i32, %c0_i32_0 : i32, i32
  }
  func.func @transform_7(%arg0: i32, %arg1: i32) -> (i32, i32) {
    %c0_i32 = arith.constant 0 : i32
    %c0_i32_0 = arith.constant 0 : i32
    return %arg0, %c0_i32 : i32, i32
  }
}

</mosaic_0001>

<bundles_post_ra>
// kernel: qgnn_forward.4
= control target key start
LH: loop header
LB: loop body
LE: loop exit
PB: predicated region body
PF: predicated region fallthrough
CT: control target
= control target key end

     0   :  { %s1150_s9 = smov 0   ;;  %s1237_s0 = inlined_call_operand.vmem [shape: bf16[1024,128], index: 0, kind: input, shape index: {}]   ;;  %s1238_s1 = inlined_call_operand.vmem [shape: bf16[128,128], index: 1, kind: input, shape index: {}]   ;;  %s1239_s2 = inlined_call_operand.vmem [shape: bf16[1024,128], index: 2, kind: output, shape index: {}]  }
   0x1 LB: > { %s813_s10 = sadd.s32 4294967295, %s1133_s9   ;;  %p817_p0 = scmp.ge.s32.totalorder %s1133_s9, 1  ;;  %s1133_s9 = sphi %s1150_s9, %s12_s9  }
   0x2   : > { %p113_p1 = scmp.lt.s32.totalorder %s1133_s9, 5 }
   0x4   : > { %p114_p2 = pnand %p817_p0, %p113_p1 }
   0x5   : > { %v1103_v0 = vld [vmem:[%s1238_s1] sm:$0xff] (!%p114_p2)   ;;  %s818_s13 = sshll.u32 (!%p114_p2), %s813_s10, 5  ;;  %v1104_v1 = vld [vmem:[%s1238_s1 + $0x8] sm:$0xff] (!%p114_p2)   ;;  %v1105_v2 = vld [vmem:[%s1238_s1 + $0x10] sm:$0xff] (!%p114_p2)  }
   0x6   : > { %117 = sbr.rel (%p114_p2) target bundleno = 285 (0x11d), region = 28  ;;  %p136_p3 = scmp.lt.s32.totalorder (!%p114_p2), %s818_s13, 127  ;;  %1031 = vmatprep.subr.bf16.mxu0 (!%p114_p2), %v1103_v0  ;;  %1079 = vmatprep.subr.bf16.mxu1 (!%p114_p2), %v1103_v0  ;;  %v1106_v3 = vld [vmem:[%s1238_s1 + $0x18] sm:$0xff] (!%p114_p2)   ;;  %v1107_v6 = vld [vmem:[%s1238_s1 + $0x20] sm:$0xff] (!%p114_p2)   ;;  %v1108_v7 = vld [vmem:[%s1238_s1 + $0x28] sm:$0xff] (!%p114_p2)  }
   0x7   : > { %1032 = vmatpush3.bf16.msra.mxu0 (!%p114_p2), %v1103_v0  ;;  %1087 = vmatpush3.bf16.msra.mxu1 (!%p114_p2), %v1103_v0  ;;  %v1109_v8 = vld [vmem:[%s1238_s1 + $0x30] sm:$0xff] (!%p114_p2)   ;;  %v1110_v9 = vld [vmem:[%s1238_s1 + $0x38] sm:$0xff] (!%p114_p2)  }
   0x8   : > { %1033 = vmatprep.subr.bf16.mxu0 (!%p114_p2), %v1104_v1  ;;  %1080 = vmatprep.subr.bf16.mxu1 (!%p114_p2), %v1104_v1 }
   0xb   : > { %1034 = vmatpush3.bf16.msra.mxu0 (!%p114_p2), %v1104_v1  ;;  %1088 = vmatpush3.bf16.msra.mxu1 (!%p114_p2), %v1104_v1 }
   0xc   : > { %1035 = vmatprep.subr.bf16.mxu0 (!%p114_p2), %v1105_v2  ;;  %1081 = vmatprep.subr.bf16.mxu1 (!%p114_p2), %v1105_v2 }
   0xd   : > { %s1241_s13 = smov (!%p136_p3, %s818_s13), 127 }
   0xe   : > { %s819_s18 = sshll.u32 %s1241_s13, 2 }
   0xf   : > { %s1175_s21 = scalar_lea.vmem %s1237_s0, %s819_s18  ;;  %1036 = vmatpush3.bf16.msra.mxu0 %v1105_v2  ;;  %1089 = vmatpush3.bf16.msra.mxu1 %v1105_v2  ;;  %s1213_s6 = scalar_lea.vmem %s1239_s2, %s819_s18 }
  0x10   : > { %v1111_v4 = vld [vmem:[%s1175_s21] sm:$0xff]   ;;  %1037 = vmatprep.subr.bf16.mxu0 %v1106_v3  ;;  %1082 = vmatprep.subr.bf16.mxu1 %v1106_v3  ;;  %v1113_v10 = vld [vmem:[%s1175_s21 + $0x8] sm:$0xff]   ;;  %v1115_v12 = vld [vmem:[%s1175_s21 + $0x10] sm:$0xff]  }
  0x11   : > { %v1112_v5 = vld [vmem:[%s1175_s21 + $0x40] sm:$0xff]   ;;  %1047 = vmatprep.mubr.bf16.mxu0 %v1111_v4  ;;  %v1114_v11 = vld [vmem:[%s1175_s21 + $0x48] sm:$0xff]   ;;  %v1116_v13 = vld [vmem:[%s1175_s21 + $0x50] sm:$0xff]  }
  0x12   : > { %1063 = vmatprep.mubr.bf16.mxu1 %v1112_v5  ;;  %v1117_v14 = vld [vmem:[%s1175_s21 + $0x18] sm:$0xff]   ;;  %v1119_v16 = vld [vmem:[%s1175_s21 + $0x20] sm:$0xff]   ;;  %v1121_v18 = vld [vmem:[%s1175_s21 + $0x28] sm:$0xff]  }
  0x13   : > { %1038 = vmatpush3.bf16.msra.mxu0 %v1106_v3  ;;  %1090 = vmatpush3.bf16.msra.mxu1 %v1106_v3  ;;  %v1118_v15 = vld [vmem:[%s1175_s21 + $0x58] sm:$0xff]   ;;  %v1120_v17 = vld [vmem:[%s1175_s21 + $0x60] sm:$0xff]   ;;  %v1122_v19 = vld [vmem:[%s1175_s21 + $0x68] sm:$0xff]  }
  0x14   : > { %1039 = vmatprep.subr.bf16.mxu0 %v1107_v6  ;;  %1083 = vmatprep.subr.bf16.mxu1 %v1107_v6  ;;  %v1123_v20 = vld [vmem:[%s1175_s21 + $0x30] sm:$0xff]   ;;  %v1125_v22 = vld [vmem:[%s1175_s21 + $0x38] sm:$0xff]  }
  0x15   : > { %v1124_v21 = vld [vmem:[%s1175_s21 + $0x70] sm:$0xff]   ;;  %v1126_v23 = vld [vmem:[%s1175_s21 + $0x78] sm:$0xff]  }
  0x17   : > { %1040 = vmatpush3.bf16.msra.mxu0 %v1107_v6  ;;  %1091 = vmatpush3.bf16.msra.mxu1 %v1107_v6 }
  0x18   : > { %1041 = vmatprep.subr.bf16.mxu0 %v1108_v7  ;;  %1084 = vmatprep.subr.bf16.mxu1 %v1108_v7 }
  0x1b   : > { %1042 = vmatpush3.bf16.msra.mxu0 %v1108_v7  ;;  %1092 = vmatpush3.bf16.msra.mxu1 %v1108_v7 }
  0x1c   : > { %1043 = vmatprep.subr.bf16.mxu0 %v1109_v8  ;;  %1085 = vmatprep.subr.bf16.mxu1 %v1109_v8 }
  0x1f   : > { %1044 = vmatpush3.bf16.msra.mxu0 %v1109_v8  ;;  %1093 = vmatpush3.bf16.msra.mxu1 %v1109_v8 }
  0x20   : > { %1045 = vmatprep.subr.bf16.mxu0 %v1110_v9  ;;  %1086 = vmatprep.subr.bf16.mxu1 %v1110_v9 }
  0x23   : > { %1046 = vmatpush3.bf16.msra.mxu0 %v1110_v9  ;;  %1094 = vmatpush3.bf16.msra.mxu1 %v1110_v9 }
  0x26   : > { %1048 = vmatmul.mubr.bf16.vlgmr.msra.gmra.mrb[0].mxu0 %v1113_v10  ;;  %1064 = vmatmul.mubr.bf16.vlgmr.msra.gmra.mrb[0].mxu1 %v1114_v11 }
  0x27   : > { %1051 = vmatprep.mubr.bf16.mxu0 %v1115_v12  ;;  %1067 = vmatprep.mubr.bf16.mxu1 %v1116_v13 }
  0x2e   : > { %1052 = vmatmul.mubr.bf16.gmra.mrb[4].mxu0 %v1117_v14  ;;  %1068 = vmatmul.mubr.bf16.gmra.mrb[4].mxu1 %v1118_v15 }
  0x2f   : > { %1055 = vmatprep.mubr.bf16.mxu0 %v1119_v16  ;;  %1071 = vmatprep.mubr.bf16.mxu1 %v1120_v17 }
  0x36   : > { %1056 = vmatmul.mubr.bf16.gmra.mrb[8].mxu0 %v1121_v18  ;;  %1072 = vmatmul.mubr.bf16.gmra.mrb[8].mxu1 %v1122_v19 }
  0x37   : > { %1059 = vmatprep.mubr.bf16.mxu0 %v1123_v20  ;;  %1075 = vmatprep.mubr.bf16.mxu1 %v1124_v21 }
  0x3e   : > { %1060 = vmatmul.mubr.bf16.gmra.mrb[12].mxu0 %v1125_v22  ;;  %1076 = vmatmul.mubr.bf16.gmra.mrb[12].mxu1 %v1126_v23 }
  0xf9   : > { %v1049_v24 = vpop.f32.mrb[0].mxu0  ;;  %v1065_v25 = vpop.f32.mrb[0].mxu1 }
  0xfa   : > { %vm503_vm0 = vcmp.gt.f32.partialorder %v1049_v24, 0.0  ;;  %v535_v26 = vmul.f32 0.01, %v1049_v24  ;;  %v551_v27 = vmul.f32 0.01, %v1065_v25  ;;  %vm519_vm1 = vcmp.gt.f32.partialorder %v1065_v25, 0.0 }
  0xfb   : > { %v374_v28 = vpop.f32.mrb[1].mxu0  ;;  %v438_v29 = vpop.f32.mrb[1].mxu1 }
  0xfc   : > { %v533_v30 = vmul.f32 0.01, %v374_v28  ;;  %v1050_v31 = vpop.f32.mrb[2].mxu0  ;;  %v1066_v32 = vpop.f32.mrb[2].mxu1  ;;  %v567_v33 = vsel %vm503_vm0, %v1049_v24, %v535_v26  ;;  %v549_v34 = vmul.f32 0.01, %v438_v29  ;;  %v583_v36 = vsel %vm519_vm1, %v1065_v25, %v551_v27 }
  0xfd   : > { %vm504_vm2 = vcmp.gt.f32.partialorder %v1050_v31, 0.0  ;;  %v536_v35 = vmul.f32 0.01, %v1050_v31  ;;  %vm501_vm3 = vcmp.gt.f32.partialorder %v374_v28, 0.0  ;;  %vm520_vm4 = vcmp.gt.f32.partialorder %v1066_v32, 0.0  ;;  %v377_v38 = vpop.f32.mrb[3].mxu0 }
  0xfe   : > { %v552_v37 = vmul.f32 0.01, %v1066_v32  ;;  %v441_v39 = vpop.f32.mrb[3].mxu1  ;;  %vm517_vm5 = vcmp.gt.f32.partialorder %v438_v29, 0.0  ;;  %vm502_vm6 = vcmp.gt.f32.partialorder %v377_v38, 0.0  ;;  %v565_v45 = vsel %vm501_vm3, %v374_v28, %v533_v30 }
  0xff   : > { %v568_v40 = vsel %vm504_vm2, %v1050_v31, %v536_v35  ;;  %v534_v41 = vmul.f32 0.01, %v377_v38  ;;  %vm518_vm7 = vcmp.gt.f32.partialorder %v441_v39, 0.0  ;;  %v550_v44 = vmul.f32 0.01, %v441_v39 }
 0x100   : > { %v920_v42 = vpack.c.bf16 %v568_v40, %v567_v33  ;;  %v584_v43 = vsel %vm520_vm4, %v1066_v32, %v552_v37  ;;  %v581_v50 = vsel %vm517_vm5, %v438_v29, %v549_v34 }
 0x101   : > { %v960_v46 = vpack.c.bf16 %v584_v43, %v583_v36  ;;  %v566_v47 = vsel %vm502_vm6, %v377_v38, %v534_v41  ;;  %v1053_v48 = vpop.f32.mrb[4].mxu0  ;;  %v1069_v49 = vpop.f32.mrb[4].mxu1  ;;  %v582_v52 = vsel %vm518_vm7, %v441_v39, %v550_v44 }
 0x102   : > { %992 = vst [vmem:[%s1213_s6 + $0x8] sm:$0xff] %v920_v42   ;;  %v915_v51 = vpack.c.bf16 %v566_v47, %v565_v45  ;;  %v539_v53 = vmul.f32 0.01, %v1053_v48  ;;  %v390_v54 = vpop.f32.mrb[5].mxu0  ;;  %v454_v55 = vpop.f32.mrb[5].mxu1  ;;  %v955_v56 = vpack.c.bf16 %v582_v52, %v581_v50  ;;  %vm507_vm8 = vcmp.gt.f32.partialorder %v1053_v48, 0.0 }
 0x103   : > { %1000 = vst [vmem:[%s1213_s6 + $0x48] sm:$0xff] %v960_v46   ;;  %v555_v57 = vmul.f32 0.01, %v1069_v49  ;;  %v1054_v58 = vpop.f32.mrb[6].mxu0  ;;  %v1070_v59 = vpop.f32.mrb[6].mxu1  ;;  %vm523_vm9 = vcmp.gt.f32.partialorder %v1069_v49, 0.0 }
 0x104   : > { %916 = vst [vmem:[%s1213_s6] sm:$0xff] %v915_v51   ;;  %v537_v60 = vmul.f32 0.01, %v390_v54  ;;  %v553_v61 = vmul.f32 0.01, %v454_v55  ;;  %v393_v62 = vpop.f32.mrb[7].mxu0  ;;  %999 = vst [vmem:[%s1213_s6 + $0x40] sm:$0xff] %v955_v56   ;;  %v571_v1 = vsel %vm507_vm8, %v1053_v48, %v539_v53 }
 0x105   : > { %vm505_vm10 = vcmp.gt.f32.partialorder %v390_v54, 0.0  ;;  %vm508_vm11 = vcmp.gt.f32.partialorder %v1054_v58, 0.0  ;;  %v540_v63 = vmul.f32 0.01, %v1054_v58  ;;  %vm524_vm12 = vcmp.gt.f32.partialorder %v1070_v59, 0.0  ;;  %v457_v0 = vpop.f32.mrb[7].mxu1 }
 0x106   : > { %vm521_vm13 = vcmp.gt.f32.partialorder %v454_v55, 0.0  ;;  %v556_v2 = vmul.f32 0.01, %v1070_v59  ;;  %vm506_vm14 = vcmp.gt.f32.partialorder %v393_v62, 0.0  ;;  %v538_v4 = vmul.f32 0.01, %v393_v62 }
 0x107   : > { %v572_v3 = vsel %vm508_vm11, %v1054_v58, %v540_v63  ;;  %vm522_vm15 = vcmp.gt.f32.partialorder %v457_v0, 0.0  ;;  %v554_v5 = vmul.f32 0.01, %v457_v0  ;;  %v587_v6 = vsel %vm523_vm9, %v1069_v49, %v555_v57 }
 0x108   : > { %v569_v7 = vsel %vm505_vm10, %v390_v54, %v537_v60  ;;  %v930_v8 = vpack.c.bf16 %v572_v3, %v571_v1  ;;  %v588_v9 = vsel %vm524_vm12, %v1070_v59, %v556_v2  ;;  %v585_v10 = vsel %vm521_vm13, %v454_v55, %v553_v61 }
 0x109   : > { %v970_v11 = vpack.c.bf16 %v588_v9, %v587_v6  ;;  %v570_v12 = vsel %vm506_vm14, %v393_v62, %v538_v4  ;;  %v586_v13 = vsel %vm522_vm15, %v457_v0, %v554_v5  ;;  %v1057_v14 = vpop.f32.mrb[8].mxu0  ;;  %v1073_v15 = vpop.f32.mrb[8].mxu1 }
 0x10a   : > { %994 = vst [vmem:[%s1213_s6 + $0x18] sm:$0xff] %v930_v8   ;;  %v925_v16 = vpack.c.bf16 %v570_v12, %v569_v7  ;;  %v965_v17 = vpack.c.bf16 %v586_v13, %v585_v10  ;;  %vm511_vm0 = vcmp.gt.f32.partialorder %v1057_v14, 0.0  ;;  %v543_v18 = vmul.f32 0.01, %v1057_v14  ;;  %v406_v19 = vpop.f32.mrb[9].mxu0  ;;  %v470_v20 = vpop.f32.mrb[9].mxu1 }
 0x10b   : > { %1002 = vst [vmem:[%s1213_s6 + $0x58] sm:$0xff] %v970_v11   ;;  %vm527_vm1 = vcmp.gt.f32.partialorder %v1073_v15, 0.0  ;;  %v559_v21 = vmul.f32 0.01, %v1073_v15  ;;  %v541_v22 = vmul.f32 0.01, %v406_v19 }
 0x10c   : > { %993 = vst [vmem:[%s1213_s6 + $0x10] sm:$0xff] %v925_v16   ;;  %1001 = vst [vmem:[%s1213_s6 + $0x50] sm:$0xff] %v965_v17   ;;  %v557_v23 = vmul.f32 0.01, %v470_v20  ;;  %v1058_v24 = vpop.f32.mrb[10].mxu0  ;;  %v1074_v25 = vpop.f32.mrb[10].mxu1  ;;  %v575_v26 = vsel %vm511_vm0, %v1057_v14, %v543_v18 }
 0x10d   : > { %vm509_vm2 = vcmp.gt.f32.partialorder %v406_v19, 0.0  ;;  %vm512_vm3 = vcmp.gt.f32.partialorder %v1058_v24, 0.0  ;;  %v544_v27 = vmul.f32 0.01, %v1058_v24  ;;  %v409_v28 = vpop.f32.mrb[11].mxu0  ;;  %v473_v29 = vpop.f32.mrb[11].mxu1  ;;  %v591_v34 = vsel %vm527_vm1, %v1073_v15, %v559_v21 }
 0x10e   : > { %vm525_vm4 = vcmp.gt.f32.partialorder %v470_v20, 0.0  ;;  %vm528_vm5 = vcmp.gt.f32.partialorder %v1074_v25, 0.0  ;;  %v560_v30 = vmul.f32 0.01, %v1074_v25  ;;  %vm510_vm6 = vcmp.gt.f32.partialorder %v409_v28, 0.0 }
 0x10f   : > { %v576_v31 = vsel %vm512_vm3, %v1058_v24, %v544_v27  ;;  %v542_v32 = vmul.f32 0.01, %v409_v28  ;;  %vm526_vm7 = vcmp.gt.f32.partialorder %v473_v29, 0.0  ;;  %v558_v33 = vmul.f32 0.01, %v473_v29 }
 0x110   : > { %v573_v35 = vsel %vm509_vm2, %v406_v19, %v541_v22  ;;  %v940_v36 = vpack.c.bf16 %v576_v31, %v575_v26  ;;  %v592_v37 = vsel %vm528_vm5, %v1074_v25, %v560_v30  ;;  %v589_v38 = vsel %vm525_vm4, %v470_v20, %v557_v23 }
 0x111   : > { %v980_v39 = vpack.c.bf16 %v592_v37, %v591_v34  ;;  %v574_v40 = vsel %vm510_vm6, %v409_v28, %v542_v32  ;;  %v590_v41 = vsel %vm526_vm7, %v473_v29, %v558_v33  ;;  %v1061_v42 = vpop.f32.mrb[12].mxu0  ;;  %v1077_v43 = vpop.f32.mrb[12].mxu1 }
 0x112   : > { %996 = vst [vmem:[%s1213_s6 + $0x28] sm:$0xff] %v940_v36   ;;  %v935_v44 = vpack.c.bf16 %v574_v40, %v573_v35  ;;  %v975_v45 = vpack.c.bf16 %v590_v41, %v589_v38  ;;  %vm515_vm8 = vcmp.gt.f32.partialorder %v1061_v42, 0.0  ;;  %v547_v46 = vmul.f32 0.01, %v1061_v42  ;;  %v422_v47 = vpop.f32.mrb[13].mxu0  ;;  %v486_v48 = vpop.f32.mrb[13].mxu1 }
 0x113   : > { %1004 = vst [vmem:[%s1213_s6 + $0x68] sm:$0xff] %v980_v39   ;;  %vm531_vm9 = vcmp.gt.f32.partialorder %v1077_v43, 0.0  ;;  %v563_v49 = vmul.f32 0.01, %v1077_v43  ;;  %v545_v50 = vmul.f32 0.01, %v422_v47 }
 0x114   : > { %995 = vst [vmem:[%s1213_s6 + $0x20] sm:$0xff] %v935_v44   ;;  %1003 = vst [vmem:[%s1213_s6 + $0x60] sm:$0xff] %v975_v45   ;;  %v561_v51 = vmul.f32 0.01, %v486_v48  ;;  %v1062_v52 = vpop.f32.mrb[14].mxu0  ;;  %v1078_v53 = vpop.f32.mrb[14].mxu1  ;;  %v579_v54 = vsel %vm515_vm8, %v1061_v42, %v547_v46 }
 0x115   : > { %vm513_vm10 = vcmp.gt.f32.partialorder %v422_v47, 0.0  ;;  %vm516_vm11 = vcmp.gt.f32.partialorder %v1062_v52, 0.0  ;;  %v548_v55 = vmul.f32 0.01, %v1062_v52  ;;  %v425_v56 = vpop.f32.mrb[15].mxu0  ;;  %v489_v57 = vpop.f32.mrb[15].mxu1  ;;  %v595_v62 = vsel %vm531_vm9, %v1077_v43, %v563_v49 }
 0x116   : > { %vm529_vm12 = vcmp.gt.f32.partialorder %v486_v48, 0.0  ;;  %vm532_vm13 = vcmp.gt.f32.partialorder %v1078_v53, 0.0  ;;  %v564_v58 = vmul.f32 0.01, %v1078_v53  ;;  %vm514_vm14 = vcmp.gt.f32.partialorder %v425_v56, 0.0 }
 0x117   : > { %v580_v59 = vsel %vm516_vm11, %v1062_v52, %v548_v55  ;;  %v546_v60 = vmul.f32 0.01, %v425_v56  ;;  %vm530_vm15 = vcmp.gt.f32.partialorder %v489_v57, 0.0  ;;  %v562_v61 = vmul.f32 0.01, %v489_v57 }
 0x118   : > { %v577_v63 = vsel %vm513_vm10, %v422_v47, %v545_v50  ;;  %v950_v0 = vpack.c.bf16 %v580_v59, %v579_v54  ;;  %v596_v1 = vsel %vm532_vm13, %v1078_v53, %v564_v58  ;;  %v593_v2 = vsel %vm529_vm12, %v486_v48, %v561_v51 }
 0x119   : > { %v990_v3 = vpack.c.bf16 %v596_v1, %v595_v62  ;;  %v578_v4 = vsel %vm514_vm14, %v425_v56, %v546_v60  ;;  %v594_v5 = vsel %vm530_vm15, %v489_v57, %v562_v61 }
 0x11a   : > { %998 = vst [vmem:[%s1213_s6 + $0x38] sm:$0xff] %v950_v0   ;;  %v945_v6 = vpack.c.bf16 %v578_v4, %v577_v63  ;;  %v985_v7 = vpack.c.bf16 %v594_v5, %v593_v2 }
 0x11b   : > { %1006 = vst [vmem:[%s1213_s6 + $0x78] sm:$0xff] %v990_v3  }
 0x11c   : > { %997 = vst [vmem:[%s1213_s6 + $0x30] sm:$0xff] %v945_v6   ;;  %1005 = vst [vmem:[%s1213_s6 + $0x70] sm:$0xff] %v985_v7  }
 0x11d PF: > { %s12_s9 = sadd.s32 1, %s1133_s9  }
 0x11e   : > { %p9_p4 = scmp.ge.s32.totalorder %s12_s9, 6  }
 0x120   :  { %11 = sbr.rel (!%p9_p4) target bundleno = 1 (0x1), region = 58 }

// kernel: qgnn_forward.5
= control target key start
LH: loop header
LB: loop body
LE: loop exit
PB: predicated region body
PF: predicated region fallthrough
CT: control target
= control target key end

     0   :  { %s2052_s24 = smov 0   ;;  %s2054_s25 = smov 0   ;;  %s2357_s0 = inlined_call_operand.vmem [shape: s32[1,1024], index: 0, kind: input, shape index: {}]   ;;  %s2358_s1 = inlined_call_operand.vmem [shape: bf16[1024,128], index: 1, kind: input, shape index: {}]   ;;  %s2359_s2 = inlined_call_operand.vmem [shape: bf16[256,128], index: 2, kind: input, shape index: {}]   ;;  %s2360_s3 = inlined_call_operand.vmem [shape: f32[256,1], index: 3, kind: input, shape index: {}]   ;;  %s2361_s4 = inlined_call_operand.vmem [shape: bf16[128,128], index: 4, kind: input, shape index: {}]   ;;  %s2362_s5 = inlined_call_operand.vmem [shape: bf16[128,128], index: 5, kind: input, shape index: {}]   ;;  %s2363_s6 = inlined_call_operand.vmem [shape: f32[1,128], index: 6, kind: input, shape index: {}]   ;;  %s2364_s7 = inlined_call_operand.vmem [shape: bf16[256,128], index: 7, kind: output, shape index: {}]  }
   0x1   :  { %s2056_s26 = smov 0   ;;  %s2058_s27 = smov 0  }
   0x2   :  { %s2060_s28 = smov 0  }
   0x3 LB: > { %s26_s29 = sadd.s32 1, %s1999_s26  ;;  %s29_s30 = sadd.s32 1, %s2003_s27  ;;  %s2007_s28 = sphi %s2060_s28, %s17_s28   ;;  %s2003_s27 = sphi %s2058_s27, %s2371_s27   ;;  %s1999_s26 = sphi %s2056_s26, %s2370_s26   ;;  %s1995_s25 = sphi %s2054_s25, %s2369_s25   ;;  %s1991_s24 = sphi %s2052_s24, %s2368_s24  }
   0x4   : > { %p27_p0 = scmp.ge.s32.totalorder %s26_s29, 4  ;;  %p1525_p1 = scmp.ge.s32.totalorder %s2007_s28, 1 }
   0x5   : > { %p282_p2 = scmp.lt.s32.totalorder %s2007_s28, 9 }
   0x6   : > { %s2373_s29 = smov (%p27_p0, %s26_s29), 0  ;;  %s2375_s30 = smov (!%p27_p0, %s29_s30), %s2003_s27 }
   0x7   : > { %p283_p3 = pnand %p1525_p1, %p282_p2  ;;  %p31_p4 = scmp.ge.s32.totalorder %s2375_s30, 2 }
   0x8   : > { %s1526_s8 = sshll.u32 (!%p283_p3), %s1991_s24, 1  ;;  %s1527_s9 = sshll.u32 (!%p283_p3), %s1991_s24, 5 }
   0x9   : > { %s2377_s30 = smov (%p31_p4, %s2375_s30), 0  ;;  %286 = sbr.rel (%p283_p3) target bundleno = 667 (0x29b), region = 48 }
   0xa   : > { %2365 = sst [smem:[#allocation3_spill]] %s2377_s30  ;;  %p329_p5 = scmp.lt.s32.totalorder (!%p283_p3), %s1526_s8, 7 }
   0xb   : > { %p334_p6 = scmp.lt.s32.totalorder (!%p283_p3), %s1527_s9, 127  ;;  %s1529_s10 = sshll.u32 (!%p283_p3), %s1995_s25, 4 }
   0xc   : > { %p340_p7 = scmp.lt.s32.totalorder (!%p283_p3), %s1529_s10, 31  ;;  %p1535_p8 = scmp.ne.s32.totalorder (!%p283_p3), %s1991_s24, 0 }
  0x10   : > { %s2379_s8 = smov (!%p329_p5, %s1526_s8), 7  ;;  %s2381_s9 = smov (!%p334_p6, %s1527_s9), 127 }
  0x11   : > { %s1528_s14 = sshll.u32 %s2381_s9, 2  ;;  %s2383_s10 = smov (!%p340_p7, %s1529_s10), 31  ;;  %v2009_v0 = vmov (!%p1535_p8), 0.0  }
  0x12   : > { %s2098_s17 = scalar_lea.vmem %s2358_s1, %s1528_s14  ;;  %s1530_s18 = sshll.u32 %s2383_s10, 2  ;;  %362 = vst [vmem:[#allocation2] sm:$0xff] (!%p1535_p8), %v2009_v0  ;;  %363 = vst [vmem:[#allocation2 + $0x8] sm:$0xff] (!%p1535_p8), %v2009_v0 }
  0x13   : > { %s1532_s19 = sshll.u32 %s2383_s10, 3  ;;  %s2103_s22 = scalar_lea.vmem %s2359_s2, %s1530_s18  ;;  %364 = vst [vmem:[#allocation2 + $0x10] sm:$0xff] (!%p1535_p8), %v2009_v0  ;;  %365 = vst [vmem:[#allocation2 + $0x18] sm:$0xff] (!%p1535_p8), %v2009_v0 }
  0x14   : > { %s2108_s11 = scalar_lea.vmem %s2360_s3, %s1532_s19  ;;  %s2113_s13 = scalar_lea.vmem %s2364_s7, %s1530_s18  ;;  %366 = vst [vmem:[#allocation2 + $0x20] sm:$0xff] (!%p1535_p8), %v2009_v0  ;;  %367 = vst [vmem:[#allocation2 + $0x28] sm:$0xff] (!%p1535_p8), %v2009_v0 }
  0x15   : > { %361 = sbr.rel (%p1535_p8) target bundleno = 28 (0x1c), region = 52  ;;  %368 = vst [vmem:[#allocation2 + $0x30] sm:$0xff] (!%p1535_p8), %v2009_v0  ;;  %369 = vst [vmem:[#allocation2 + $0x38] sm:$0xff] (!%p1535_p8), %v2009_v0 }
  0x16   : > { %370 = vst [vmem:[#allocation2 + $0x40] sm:$0xff] (!%p1535_p8), %v2009_v0  ;;  %371 = vst [vmem:[#allocation2 + $0x48] sm:$0xff] (!%p1535_p8), %v2009_v0 }
  0x17   : > { %372 = vst [vmem:[#allocation2 + $0x50] sm:$0xff] (!%p1535_p8), %v2009_v0  ;;  %373 = vst [vmem:[#allocation2 + $0x58] sm:$0xff] (!%p1535_p8), %v2009_v0 }
  0x18   : > { %374 = vst [vmem:[#allocation2 + $0x60] sm:$0xff] (!%p1535_p8), %v2009_v0  ;;  %375 = vst [vmem:[#allocation2 + $0x68] sm:$0xff] (!%p1535_p8), %v2009_v0 }
  0x19   : > { %376 = vst [vmem:[#allocation2 + $0x70] sm:$0xff] (!%p1535_p8), %v2009_v0  ;;  %377 = vst [vmem:[#allocation2 + $0x78] sm:$0xff] (!%p1535_p8), %v2009_v0 }
  0x1c PF: > { %v1927_v1 = vld [vmem:[%s2098_s17 + $0x40] sm:$0xff]   ;;  %v1929_v3 = vld [vmem:[%s2098_s17 + $0x48] sm:$0xff]   ;;  %v378_v4 = vlaneseq  ;;  %v1931_v6 = vld [vmem:[%s2098_s17 + $0x50] sm:$0xff]   ;;  %s1536_s30 = sshll.u32 %s1995_s25, 7  ;;  %s2366_s14 = scalar_lea.vmem %s2357_s0, %s2379_s8  ;;  %v2010_v30 = vmov 1.0|1.0  }
  0x1d   : > { %v1928_v2 = vld [vmem:[%s2098_s17] sm:$0xff]   ;;  %1692 = vmatprep.subr.bf16.mxu0 %v1927_v1  ;;  %1852 = vmatprep.subr.bf16.mxu1 %v1927_v1  ;;  %v1930_v5 = vld [vmem:[%s2098_s17 + $0x8] sm:$0xff]   ;;  %v1932_v8 = vld [vmem:[%s2098_s17 + $0x10] sm:$0xff]   ;;  %v2130_v14 = vstv %s1536_s30  ;;  %p1585_p9 = scmp.ne.s32.totalorder %s1991_s24, 3 }
  0x1e   : > { %1693 = vmatpush3.bf16.msra.mxu0 %v1928_v2  ;;  %1860 = vmatpush3.bf16.msra.mxu1 %v1928_v2  ;;  %v2121_v7 = vshrl.u32 %v378_v4, 7  ;;  %v1933_v9 = vld [vmem:[%s2098_s17 + $0x58] sm:$0xff]   ;;  %v1935_v13 = vld [vmem:[%s2098_s17 + $0x60] sm:$0xff]   ;;  %v1937_v21 = vld [vmem:[%s2098_s17 + $0x68] sm:$0xff]  }
  0x1f   : > { %1694 = vmatprep.subr.bf16.mxu0 %v1929_v3  ;;  %1853 = vmatprep.subr.bf16.mxu1 %v1929_v3  ;;  %v1934_v11 = vld [vmem:[%s2098_s17 + $0x18] sm:$0xff]   ;;  %v1936_v17 = vld [vmem:[%s2098_s17 + $0x20] sm:$0xff]   ;;  %v1938_v26 = vld [vmem:[%s2098_s17 + $0x28] sm:$0xff]  }
  0x20   : > { %v380_v10 = vadd.s32 8, %v2121_v7  ;;  %v387_v12 = vadd.s32 64, %v2121_v7  ;;  %v388_v15 = vadd.s32 72, %v2121_v7  ;;  %v420_v16 = vsub.s32 1, %v2121_v7  ;;  %v413_v22 = vld [vmem:[%s2366_s14] sm:$0x3] }
  0x21   : > { %v397_v18 = vadd.s32 %v2130_v14, %v2121_v7  ;;  %v416_v25 = vsub.s32 0, %v2121_v7  ;;  %v1939_v27 = vld [vmem:[%s2098_s17 + $0x70] sm:$0xff]   ;;  %v381_v28 = vadd.s32 16, %v2121_v7  ;;  %v382_v29 = vadd.s32 24, %v2121_v7  ;;  %v1941_v35 = vld [vmem:[%s2098_s17 + $0x78] sm:$0xff]   ;;  %v502_v59 = vld [vmem:[#allocation2] sm:$0xff] }
  0x22   : > { %1695 = vmatpush3.bf16.msra.mxu0 %v1930_v5  ;;  %1861 = vmatpush3.bf16.msra.mxu1 %v1930_v5  ;;  %v398_v19 = vadd.s32 %v2130_v14, %v380_v10  ;;  %v405_v20 = vadd.s32 %v2130_v14, %v387_v12  ;;  %v406_v23 = vadd.s32 %v2130_v14, %v388_v15  ;;  %v389_v31 = vadd.s32 80, %v2121_v7  ;;  %v1940_v34 = vld [vmem:[%s2098_s17 + $0x30] sm:$0xff]   ;;  %v1942_v40 = vld [vmem:[%s2098_s17 + $0x38] sm:$0xff]   ;;  %v510_v61 = vld [vmem:[#allocation2 + $0x40] sm:$0xff] }
  0x23   : > { %1696 = vmatprep.subr.bf16.mxu0 %v1931_v6  ;;  %1854 = vmatprep.subr.bf16.mxu1 %v1931_v6  ;;  %v2146_v24 = vrot.slane %v413_v22, %v420_v16  ;;  %v390_v32 = vadd.s32 88, %v2121_v7  ;;  %v2160_v33 = vrot.slane %v413_v22, %v416_v25  ;;  %v399_v36 = vadd.s32 %v2130_v14, %v381_v28  ;;  %v503_v3 = vld [vmem:[#allocation2 + $0x8] sm:$0xff]  ;;  %v504_v15 = vld [vmem:[#allocation2 + $0x10] sm:$0xff]  ;;  %v513_v25 = vld [vmem:[#allocation2 + $0x58] sm:$0xff] }
  0x24   : > { %v400_v37 = vadd.s32 %v2130_v14, %v382_v29  ;;  %v407_v38 = vadd.s32 %v2130_v14, %v389_v31  ;;  %v383_v41 = vadd.s32 32, %v2121_v7  ;;  %v384_v42 = vadd.s32 40, %v2121_v7  ;;  %v511_v5 = vld [vmem:[#allocation2 + $0x48] sm:$0xff] }
  0x25   : > { %vm423_vm0 = vcmp.eq.s32.totalorder %v397_v18, %v2146_v24  ;;  %vm425_vm1 = vcmp.eq.s32.totalorder %v398_v19, %v2146_v24  ;;  %vm439_vm2 = vcmp.eq.s32.totalorder %v405_v20, %v2146_v24  ;;  %vm441_vm4 = vcmp.eq.s32.totalorder %v406_v23, %v2146_v24 }
  0x26   : > { %1697 = vmatpush3.bf16.msra.mxu0 %v1932_v8  ;;  %1862 = vmatpush3.bf16.msra.mxu1 %v1932_v8  ;;  %vm1553_vm3 = vmpackc.low %vm425_vm1, %vm423_vm0  ;;  %v408_v39 = vadd.s32 %v2130_v14, %v390_v32  ;;  %vm422_vm6 = vcmp.eq.s32.totalorder %v397_v18, %v2160_v33  ;;  %vm424_vm7 = vcmp.eq.s32.totalorder %v398_v19, %v2160_v33  ;;  %v391_v43 = vadd.s32 96, %v2121_v7 }
  0x27   : > { %1698 = vmatprep.subr.bf16.mxu0 %v1933_v9  ;;  %1855 = vmatprep.subr.bf16.mxu1 %v1933_v9  ;;  %vm1569_vm5 = vmpackc.low %vm441_vm4, %vm439_vm2  ;;  %vm438_vm8 = vcmp.eq.s32.totalorder %v405_v20, %v2160_v33  ;;  %vm440_vm9 = vcmp.eq.s32.totalorder %v406_v23, %v2160_v33  ;;  %vm427_vm10 = vcmp.eq.s32.totalorder %v399_v36, %v2146_v24  ;;  %v392_v44 = vadd.s32 104, %v2121_v7  ;;  %v505_v23 = vld [vmem:[#allocation2 + $0x18] sm:$0xff] }
  0x28   : > { %1554 = vmatprep.mubr.msk.bf16.mxu0 %vm1553_vm3, %v2010_v30  ;;  %1570 = vmatprep.mubr.msk.bf16.mxu1 %vm1569_vm5, %v2010_v30  ;;  %vm429_vm11 = vcmp.eq.s32.totalorder %v400_v37, %v2146_v24  ;;  %vm1555_vm12 = vmpackc.low %vm424_vm7, %vm422_vm6  ;;  %vm443_vm13 = vcmp.eq.s32.totalorder %v407_v38, %v2146_v24  ;;  %vm445_vm14 = vcmp.eq.s32.totalorder %v408_v39, %v2146_v24  ;;  %v385_v49 = vadd.s32 48, %v2121_v7 }
  0x29   : > { %vm1571_vm15 = vmpackc.low %vm440_vm9, %vm438_vm8  ;;  %v401_v45 = vadd.s32 %v2130_v14, %v383_v41  ;;  %v402_v46 = vadd.s32 %v2130_v14, %v384_v42  ;;  %v409_v47 = vadd.s32 %v2130_v14, %v391_v43  ;;  %v410_v48 = vadd.s32 %v2130_v14, %v392_v44  ;;  %v507_v43 = vld [vmem:[#allocation2 + $0x28] sm:$0xff] }
  0x2a   : > { %1699 = vmatpush3.bf16.msra.mxu0 %v1934_v11  ;;  %1863 = vmatpush3.bf16.msra.mxu1 %v1934_v11  ;;  %vm1557_vm0 = vmpackc.low %vm429_vm11, %vm427_vm10  ;;  %vm426_vm2 = vcmp.eq.s32.totalorder %v399_v36, %v2160_v33  ;;  %vm428_vm3 = vcmp.eq.s32.totalorder %v400_v37, %v2160_v33  ;;  %vm442_vm4 = vcmp.eq.s32.totalorder %v407_v38, %v2160_v33  ;;  %v386_v50 = vadd.s32 56, %v2121_v7  ;;  %v514_v37 = vld [vmem:[#allocation2 + $0x60] sm:$0xff] }
  0x2b   : > { %1700 = vmatprep.subr.bf16.mxu0 %v1935_v13  ;;  %1856 = vmatprep.subr.bf16.mxu1 %v1935_v13  ;;  %vm1573_vm1 = vmpackc.low %vm445_vm14, %vm443_vm13  ;;  %vm444_vm5 = vcmp.eq.s32.totalorder %v408_v39, %v2160_v33  ;;  %vm431_vm6 = vcmp.eq.s32.totalorder %v401_v45, %v2146_v24  ;;  %vm433_vm7 = vcmp.eq.s32.totalorder %v402_v46, %v2146_v24  ;;  %v393_v51 = vadd.s32 112, %v2121_v7 }
  0x2c   : > { %vm1559_vm8 = vmpackc.low %vm428_vm3, %vm426_vm2  ;;  %vm447_vm9 = vcmp.eq.s32.totalorder %v409_v47, %v2146_v24  ;;  %vm449_vm10 = vcmp.eq.s32.totalorder %v410_v48, %v2146_v24  ;;  %v394_v52 = vadd.s32 120, %v2121_v7  ;;  %v403_v53 = vadd.s32 %v2130_v14, %v385_v49 }
  0x2d   : > { %vm1575_vm11 = vmpackc.low %vm444_vm5, %vm442_vm4  ;;  %v404_v54 = vadd.s32 %v2130_v14, %v386_v50  ;;  %v411_v55 = vadd.s32 %v2130_v14, %v393_v51  ;;  %vm430_vm14 = vcmp.eq.s32.totalorder %v401_v45, %v2160_v33  ;;  %v515_v45 = vld [vmem:[#allocation2 + $0x68] sm:$0xff] }
  0x2e   : > { %1701 = vmatpush3.bf16.msra.mxu0 %v1936_v17  ;;  %1864 = vmatpush3.bf16.msra.mxu1 %v1936_v17  ;;  %vm1577_vm13 = vmpackc.low %vm449_vm10, %vm447_vm9  ;;  %v412_v56 = vadd.s32 %v2130_v14, %v394_v52  ;;  %vm435_vm2 = vcmp.eq.s32.totalorder %v403_v53, %v2146_v24  ;;  %vm434_vm10 = vcmp.eq.s32.totalorder %v403_v53, %v2160_v33  ;;  %v512_v17 = vld [vmem:[#allocation2 + $0x50] sm:$0xff] }
  0x2f   : > { %1702 = vmatprep.subr.bf16.mxu0 %v1937_v21  ;;  %1857 = vmatprep.subr.bf16.mxu1 %v1937_v21  ;;  %vm437_vm3 = vcmp.eq.s32.totalorder %v404_v54, %v2146_v24  ;;  %vm451_vm5 = vcmp.eq.s32.totalorder %v411_v55, %v2146_v24 }
  0x32   : > { %1703 = vmatpush3.bf16.msra.mxu0 %v1938_v26  ;;  %1865 = vmatpush3.bf16.msra.mxu1 %v1938_v26 }
  0x33   : > { %1704 = vmatprep.subr.bf16.mxu0 %v1939_v27  ;;  %1858 = vmatprep.subr.bf16.mxu1 %v1939_v27 }
  0x36   : > { %1705 = vmatpush3.bf16.msra.mxu0 %v1940_v34  ;;  %1866 = vmatpush3.bf16.msra.mxu1 %v1940_v34 }
  0x37   : > { %1706 = vmatprep.subr.bf16.mxu0 %v1941_v35  ;;  %1859 = vmatprep.subr.bf16.mxu1 %v1941_v35  ;;  %v506_v35 = vld [vmem:[#allocation2 + $0x20] sm:$0xff] }
  0x3a   : > { %1707 = vmatpush3.bf16.msra.mxu0 %v1942_v40  ;;  %1867 = vmatpush3.bf16.msra.mxu1 %v1942_v40 }
  0x3d   : > { %1556 = vmatmul.mubr.msk.bf16.vlgmr.msra.gmra.mrb[0].mxu0 %vm1555_vm12, %v2010_v30  ;;  %1572 = vmatmul.mubr.msk.bf16.vlgmr.msra.gmra.mrb[0].mxu1 %vm1571_vm15, %v2010_v30  ;;  %vm1561_vm12 = vmpackc.low %vm433_vm7, %vm431_vm6  ;;  %vm432_vm15 = vcmp.eq.s32.totalorder %v402_v46, %v2160_v33  ;;  %vm453_vm6 = vcmp.eq.s32.totalorder %v412_v56, %v2146_v24 }
  0x3e   : > { %1558 = vmatprep.mubr.msk.bf16.mxu0 %vm1557_vm0, %v2010_v30  ;;  %1574 = vmatprep.mubr.msk.bf16.mxu1 %vm1573_vm1, %v2010_v30  ;;  %vm446_vm0 = vcmp.eq.s32.totalorder %v409_v47, %v2160_v33  ;;  %vm448_vm1 = vcmp.eq.s32.totalorder %v410_v48, %v2160_v33  ;;  %vm1563_vm4 = vmpackc.low %vm432_vm15, %vm430_vm14 }
  0x3f   : > { %vm1579_vm7 = vmpackc.low %vm448_vm1, %vm446_vm0 }
  0x40   : > { %vm1581_vm9 = vmpackc.low %vm453_vm6, %vm451_vm5 }
  0x45   : > { %1560 = vmatmul.mubr.msk.bf16.gmra.mrb[4].mxu0 %vm1559_vm8, %v2010_v30  ;;  %1576 = vmatmul.mubr.msk.bf16.gmra.mrb[4].mxu1 %vm1575_vm11, %v2010_v30  ;;  %vm1565_vm8 = vmpackc.low %vm437_vm3, %vm435_vm2  ;;  %vm436_vm11 = vcmp.eq.s32.totalorder %v404_v54, %v2160_v33 }
  0x46   : > { %1562 = vmatprep.mubr.msk.bf16.mxu0 %vm1561_vm12, %v2010_v30  ;;  %1578 = vmatprep.mubr.msk.bf16.mxu1 %vm1577_vm13, %v2010_v30  ;;  %vm450_vm12 = vcmp.eq.s32.totalorder %v411_v55, %v2160_v33  ;;  %vm452_vm13 = vcmp.eq.s32.totalorder %v412_v56, %v2160_v33  ;;  %vm1567_vm14 = vmpackc.low %vm436_vm11, %vm434_vm10  ;;  %v508_v55 = vld [vmem:[#allocation2 + $0x30] sm:$0xff] }
  0x47   : > { %vm1583_vm15 = vmpackc.low %vm452_vm13, %vm450_vm12 }
  0x4d   : > { %1564 = vmatmul.mubr.msk.bf16.gmra.mrb[8].mxu0 %vm1563_vm4, %v2010_v30  ;;  %1580 = vmatmul.mubr.msk.bf16.gmra.mrb[8].mxu1 %vm1579_vm7, %v2010_v30 }
  0x4e   : > { %1566 = vmatprep.mubr.msk.bf16.mxu0 %vm1565_vm8, %v2010_v30  ;;  %1582 = vmatprep.mubr.msk.bf16.mxu1 %vm1581_vm9, %v2010_v30 }
  0x55   : > { %1568 = vmatmul.mubr.msk.bf16.gmra.mrb[12].mxu0 %vm1567_vm14, %v2010_v30  ;;  %1584 = vmatmul.mubr.msk.bf16.gmra.mrb[12].mxu1 %vm1583_vm15, %v2010_v30 }
 0x110   : > { %v1708_v57 = vpop.f32.mrb[0].mxu0  ;;  %v1732_v58 = vpop.f32.mrb[0].mxu1 }
 0x111   : > { %v1709_v60 = vpop.f32.mrb[1].mxu0  ;;  %v1733_v62 = vpop.f32.mrb[1].mxu1 }
 0x112   : > { %v1710_v63 = vadd.f32 %v1709_v60, %v1708_v57  ;;  %v1734_v0 = vadd.f32 %v1733_v62, %v1732_v58  ;;  %v1711_v1 = vpop.f32.mrb[2].mxu0  ;;  %v1735_v2 = vpop.f32.mrb[2].mxu1  ;;  %v516_v57 = vld [vmem:[#allocation2 + $0x70] sm:$0xff] }
 0x113   : > { %v1712_v4 = vpop.f32.mrb[3].mxu0  ;;  %v1736_v6 = vpop.f32.mrb[3].mxu1 }
 0x114   : > { %v743_v7 = vadd.f32 %v1710_v63, %v502_v59  ;;  %v751_v8 = vadd.f32 %v1734_v0, %v510_v61  ;;  %v1713_v9 = vadd.f32 %v1712_v4, %v1711_v1  ;;  %v1737_v10 = vadd.f32 %v1736_v6, %v1735_v2  ;;  %v509_v63 = vld [vmem:[#allocation2 + $0x38] sm:$0xff] }
 0x115   : > { %v517_v1 = vld [vmem:[#allocation2 + $0x78] sm:$0xff] }
 0x116   : > { %759 = vst [vmem:[#allocation2] sm:$0xff] %v743_v7  ;;  %767 = vst [vmem:[#allocation2 + $0x40] sm:$0xff] %v751_v8  ;;  %v744_v11 = vadd.f32 %v1713_v9, %v503_v3  ;;  %v752_v12 = vadd.f32 %v1737_v10, %v511_v5  ;;  %v797_v9 = vld [vmem:[%s2108_s11 + $0x10] sm:$0xff] (!%p1585_p9)  ;;  %v795_v10 = vld [vmem:[%s2108_s11] sm:$0xff] (!%p1585_p9) }
 0x118   : > { %760 = vst [vmem:[#allocation2 + $0x8] sm:$0xff] %v744_v11  ;;  %768 = vst [vmem:[#allocation2 + $0x48] sm:$0xff] %v752_v12  ;;  %v1714_v13 = vpop.f32.mrb[4].mxu0  ;;  %v1738_v14 = vpop.f32.mrb[4].mxu1  ;;  %v2011_v11 = vmov (!%p1585_p9), 0   ;;  %v798_v12 = vld [vmem:[%s2108_s11 + $0x18] sm:$0xff] (!%p1585_p9) }
 0x119   : > { %v1715_v16 = vpop.f32.mrb[5].mxu0  ;;  %v1739_v18 = vpop.f32.mrb[5].mxu1  ;;  %1944 = vset.pattern.permute.xlu1 (!%p1585_p9), %v2011_v11  ;;  %1943 = vset.pattern.permute.xlu0 (!%p1585_p9), %v2011_v11 }
 0x11a   : > { %v1716_v19 = vadd.f32 %v1715_v16, %v1714_v13  ;;  %v1740_v20 = vadd.f32 %v1739_v18, %v1738_v14  ;;  %v1717_v21 = vpop.f32.mrb[6].mxu0  ;;  %v1741_v22 = vpop.f32.mrb[6].mxu1  ;;  %823 = vperm.xlu1 (!%p1585_p9), %1944, %v797_v9   ;;  %813 = vperm.xlu0 (!%p1585_p9), %1943, %v795_v10   ;;  %v796_v13 = vld [vmem:[%s2108_s11 + $0x8] sm:$0xff] (!%p1585_p9)  ;;  %v1945_v16 = vld [vmem:[%s2361_s4] sm:$0xff] (!%p1585_p9)  }
 0x11b   : > { %v1718_v24 = vpop.f32.mrb[7].mxu0  ;;  %v1742_v26 = vpop.f32.mrb[7].mxu1  ;;  %v800_v14 = vld [vmem:[%s2108_s11 + $0x28] sm:$0xff] (!%p1585_p9)  ;;  %1820 = vmatprep.subr.bf16.mxu0 (!%p1585_p9), %v1945_v16 }
 0x11c   : > { %v745_v27 = vadd.f32 %v1716_v19, %v504_v15  ;;  %v753_v28 = vadd.f32 %v1740_v20, %v512_v17  ;;  %v1719_v29 = vadd.f32 %v1718_v24, %v1717_v21  ;;  %v1743_v30 = vadd.f32 %v1742_v26, %v1741_v22  ;;  %v799_v15 = vld [vmem:[%s2108_s11 + $0x20] sm:$0xff] (!%p1585_p9)  ;;  %v1947_v18 = vld [vmem:[%s2361_s4 + $0x8] sm:$0xff] (!%p1585_p9)   ;;  %v802_v19 = vld [vmem:[%s2108_s11 + $0x38] sm:$0xff] (!%p1585_p9)  ;;  %1821 = vmatpush3.bf16.msra.mxu0 (!%p1585_p9), %v1945_v16 }
 0x11d   : > { %v1946_v17 = vld [vmem:[%s2362_s5] sm:$0xff] (!%p1585_p9)   ;;  %v1948_v20 = vld [vmem:[%s2362_s5 + $0x8] sm:$0xff] (!%p1585_p9)   ;;  %v801_v21 = vld [vmem:[%s2108_s11 + $0x30] sm:$0xff] (!%p1585_p9)  ;;  %1822 = vmatprep.subr.bf16.mxu0 (!%p1585_p9), %v1947_v18 }
 0x11e   : > { %761 = vst [vmem:[#allocation2 + $0x10] sm:$0xff] %v745_v27  ;;  %769 = vst [vmem:[#allocation2 + $0x50] sm:$0xff] %v753_v28  ;;  %v746_v31 = vadd.f32 %v1719_v29, %v505_v23  ;;  %v754_v32 = vadd.f32 %v1743_v30, %v513_v25  ;;  %828 = vperm.xlu1 (!%p1585_p9), %1944, %v798_v12   ;;  %818 = vperm.xlu0 (!%p1585_p9), %1943, %v796_v13   ;;  %v1949_v22 = vld [vmem:[%s2361_s4 + $0x10] sm:$0xff] (!%p1585_p9)   ;;  %v804_v24 = vld [vmem:[%s2108_s11 + $0x48] sm:$0xff] (!%p1585_p9) }
 0x11f   : > { %1788 = vmatprep.subr.bf16.mxu1 (!%p1585_p9), %v1946_v17  ;;  %v1950_v23 = vld [vmem:[%s2362_s5 + $0x10] sm:$0xff] (!%p1585_p9)   ;;  %v803_v25 = vld [vmem:[%s2108_s11 + $0x40] sm:$0xff] (!%p1585_p9)  ;;  %v1951_v26 = vld [vmem:[%s2361_s4 + $0x18] sm:$0xff] (!%p1585_p9)  }
 0x120   : > { %762 = vst [vmem:[#allocation2 + $0x18] sm:$0xff] %v746_v31  ;;  %770 = vst [vmem:[#allocation2 + $0x58] sm:$0xff] %v754_v32  ;;  %v1720_v33 = vpop.f32.mrb[8].mxu0  ;;  %v1744_v34 = vpop.f32.mrb[8].mxu1  ;;  %1789 = vmatpush3.bf16.msra.mxu1 (!%p1585_p9), %v1946_v17  ;;  %1823 = vmatpush3.bf16.msra.mxu0 (!%p1585_p9), %v1947_v18  ;;  %v1952_v27 = vld [vmem:[%s2362_s5 + $0x18] sm:$0xff] (!%p1585_p9)   ;;  %v805_v29 = vld [vmem:[%s2108_s11 + $0x50] sm:$0xff] (!%p1585_p9) }
 0x121   : > { %v1721_v36 = vpop.f32.mrb[9].mxu0  ;;  %v1745_v38 = vpop.f32.mrb[9].mxu1  ;;  %1790 = vmatprep.subr.bf16.mxu1 (!%p1585_p9), %v1948_v20  ;;  %1824 = vmatprep.subr.bf16.mxu0 (!%p1585_p9), %v1949_v22  ;;  %v806_v28 = vld [vmem:[%s2108_s11 + $0x58] sm:$0xff] (!%p1585_p9)  ;;  %v1953_v30 = vld [vmem:[%s2361_s4 + $0x20] sm:$0xff] (!%p1585_p9)   ;;  %v808_v32 = vld [vmem:[%s2108_s11 + $0x68] sm:$0xff] (!%p1585_p9) }
 0x122   : > { %v1722_v39 = vadd.f32 %v1721_v36, %v1720_v33  ;;  %v1746_v40 = vadd.f32 %v1745_v38, %v1744_v34  ;;  %v1723_v41 = vpop.f32.mrb[10].mxu0  ;;  %v1747_v42 = vpop.f32.mrb[10].mxu1  ;;  %838 = vperm.xlu1 (!%p1585_p9), %1944, %v800_v14   ;;  %833 = vperm.xlu0 (!%p1585_p9), %1943, %v799_v15   ;;  %v1954_v31 = vld [vmem:[%s2362_s5 + $0x20] sm:$0xff] (!%p1585_p9)   ;;  %v1955_v34 = vld [vmem:[%s2361_s4 + $0x28] sm:$0xff] (!%p1585_p9)   ;;  %v809_v38 = vld [vmem:[%s2108_s11 + $0x70] sm:$0xff] (!%p1585_p9) }
 0x123   : > { %v1724_v44 = vpop.f32.mrb[11].mxu0  ;;  %v1748_v46 = vpop.f32.mrb[11].mxu1  ;;  %v807_v33 = vld [vmem:[%s2108_s11 + $0x60] sm:$0xff] (!%p1585_p9)  ;;  %v1956_v36 = vld [vmem:[%s2362_s5 + $0x28] sm:$0xff] (!%p1585_p9)  }
 0x124   : > { %v747_v47 = vadd.f32 %v1722_v39, %v506_v35  ;;  %v755_v48 = vadd.f32 %v1746_v40, %v514_v37  ;;  %v1725_v49 = vadd.f32 %v1724_v44, %v1723_v41  ;;  %v1749_v50 = vadd.f32 %v1748_v46, %v1747_v42  ;;  %1791 = vmatpush3.bf16.msra.mxu1 (!%p1585_p9), %v1948_v20  ;;  %v1961_v35 = vld [vmem:[%s2103_s22] sm:$0xff] (!%p1585_p9)   ;;  %v810_v37 = vld [vmem:[%s2108_s11 + $0x78] sm:$0xff] (!%p1585_p9)  ;;  %v1957_v39 = vld [vmem:[%s2361_s4 + $0x30] sm:$0xff] (!%p1585_p9)  }
 0x125   : > { %1792 = vmatprep.subr.bf16.mxu1 (!%p1585_p9), %v1950_v23  ;;  %1825 = vmatpush3.bf16.msra.mxu0 (!%p1585_p9), %v1949_v22  ;;  %v1958_v40 = vld [vmem:[%s2362_s5 + $0x30] sm:$0xff] (!%p1585_p9)   ;;  %v1959_v41 = vld [vmem:[%s2361_s4 + $0x38] sm:$0xff] (!%p1585_p9)   ;;  %v1965_v46 = vld [vmem:[%s2103_s22 + $0x20] sm:$0xff] (!%p1585_p9)  }
 0x126   : > { %763 = vst [vmem:[#allocation2 + $0x20] sm:$0xff] %v747_v47  ;;  %771 = vst [vmem:[#allocation2 + $0x60] sm:$0xff] %v755_v48  ;;  %v748_v51 = vadd.f32 %v1725_v49, %v507_v43  ;;  %v756_v52 = vadd.f32 %v1749_v50, %v515_v45  ;;  %848 = vperm.xlu1 (!%p1585_p9), %1944, %v802_v19   ;;  %843 = vperm.xlu0 (!%p1585_p9), %1943, %v801_v21   ;;  %v1960_v42 = vld [vmem:[%s2362_s5 + $0x38] sm:$0xff] (!%p1585_p9)   ;;  %v1962_v43 = vld [vmem:[%s2103_s22 + $0x8] sm:$0xff] (!%p1585_p9)  }
 0x127   : > { %1826 = vmatprep.subr.bf16.mxu0 (!%p1585_p9), %v1951_v26  ;;  %1836 = vmatprep.mubr.bf16.mxu0 (!%p1585_p9), %v1961_v35  ;;  %v1963_v44 = vld [vmem:[%s2103_s22 + $0x10] sm:$0xff] (!%p1585_p9)   ;;  %v1964_v45 = vld [vmem:[%s2103_s22 + $0x18] sm:$0xff] (!%p1585_p9)   ;;  %v1966_v47 = vld [vmem:[%s2103_s22 + $0x28] sm:$0xff] (!%p1585_p9)  }
 0x128   : > { %764 = vst [vmem:[#allocation2 + $0x28] sm:$0xff] %v748_v51  ;;  %772 = vst [vmem:[#allocation2 + $0x68] sm:$0xff] %v756_v52  ;;  %v1726_v53 = vpop.f32.mrb[12].mxu0  ;;  %v1750_v54 = vpop.f32.mrb[12].mxu1  ;;  %1793 = vmatpush3.bf16.msra.mxu1 (!%p1585_p9), %v1950_v23  ;;  %v1967_v48 = vld [vmem:[%s2103_s22 + $0x30] sm:$0xff] (!%p1585_p9)   ;;  %v1968_v49 = vld [vmem:[%s2103_s22 + $0x38] sm:$0xff] (!%p1585_p9)  }
 0x129   : > { %v1727_v56 = vpop.f32.mrb[13].mxu0  ;;  %v1751_v58 = vpop.f32.mrb[13].mxu1  ;;  %1794 = vmatprep.subr.bf16.mxu1 (!%p1585_p9), %v1952_v27  ;;  %1827 = vmatpush3.bf16.msra.mxu0 (!%p1585_p9), %v1951_v26  ;;  %v781_v52 = vld [vmem:[#allocation2 + $0x10] sm:$0xff] (!%p1585_p9)  ;;  %v788_v13 = vld [vmem:[#allocation2 + $0x48] sm:$0xff] (!%p1585_p9)  ;;  %v787_v14 = vld [vmem:[#allocation2 + $0x40] sm:$0xff] (!%p1585_p9) }
 0x12a   : > { %v1728_v59 = vadd.f32 %v1727_v56, %v1726_v53  ;;  %v1752_v60 = vadd.f32 %v1751_v58, %v1750_v54  ;;  %v1729_v61 = vpop.f32.mrb[14].mxu0  ;;  %v1753_v62 = vpop.f32.mrb[14].mxu1  ;;  %778 = sbr.rel (%p1585_p9) target bundleno = 667 (0x29b), region = 56  ;;  %858 = vperm.xlu1 (!%p1585_p9), %1944, %v804_v24   ;;  %853 = vperm.xlu0 (!%p1585_p9), %1943, %v803_v25   ;;  %v779_v53 = vld [vmem:[#allocation2] sm:$0xff] (!%p1585_p9)  ;;  %v782_v54 = vld [vmem:[#allocation2 + $0x18] sm:$0xff] (!%p1585_p9)  ;;  %v789_v21 = vld [vmem:[#allocation2 + $0x50] sm:$0xff] (!%p1585_p9) }
 0x12b   : > { %v1730_v0 = vpop.f32.mrb[15].mxu0  ;;  %v1754_v2 = vpop.f32.mrb[15].mxu1  ;;  %1828 = vmatprep.subr.bf16.mxu0 (!%p1585_p9), %v1953_v30  ;;  %v790_v20 = vld [vmem:[#allocation2 + $0x58] sm:$0xff] (!%p1585_p9) }
 0x12c   : > { %v749_v3 = vadd.f32 %v1728_v59, %v508_v55  ;;  %v757_v4 = vadd.f32 %v1752_v60, %v516_v57  ;;  %v1731_v5 = vadd.f32 %v1730_v0, %v1729_v61  ;;  %v1755_v6 = vadd.f32 %v1754_v2, %v1753_v62  ;;  %1795 = vmatpush3.bf16.msra.mxu1 (!%p1585_p9), %v1952_v27  ;;  %v780_v55 = vld [vmem:[#allocation2 + $0x8] sm:$0xff] (!%p1585_p9) }
 0x12d   : > { %1796 = vmatprep.subr.bf16.mxu1 (!%p1585_p9), %v1954_v31  ;;  %1829 = vmatpush3.bf16.msra.mxu0 (!%p1585_p9), %v1953_v30 }
 0x12e   : > { %765 = vst [vmem:[#allocation2 + $0x30] sm:$0xff] %v749_v3  ;;  %773 = vst [vmem:[#allocation2 + $0x70] sm:$0xff] %v757_v4  ;;  %v750_v7 = vadd.f32 %v1731_v5, %v509_v63  ;;  %v758_v8 = vadd.f32 %v1755_v6, %v517_v1  ;;  %868 = vperm.xlu1 (!%p1585_p9), %1944, %v806_v28   ;;  %863 = vperm.xlu0 (!%p1585_p9), %1943, %v805_v29   ;;  %v783_v63 = vld [vmem:[#allocation2 + $0x20] sm:$0xff] (!%p1585_p9) }
 0x12f   : > { %1830 = vmatprep.subr.bf16.mxu0 (!%p1585_p9), %v1955_v34  ;;  %v784_v62 = vld [vmem:[#allocation2 + $0x28] sm:$0xff] (!%p1585_p9)  ;;  %v791_v28 = vld [vmem:[#allocation2 + $0x60] sm:$0xff] (!%p1585_p9) }
 0x130   : > { %766 = vst [vmem:[#allocation2 + $0x38] sm:$0xff] %v750_v7  ;;  %774 = vst [vmem:[#allocation2 + $0x78] sm:$0xff] %v758_v8  ;;  %1797 = vmatpush3.bf16.msra.mxu1 (!%p1585_p9), %v1954_v31  ;;  %v792_v27 = vld [vmem:[#allocation2 + $0x68] sm:$0xff] (!%p1585_p9) }
 0x131   : > { %1798 = vmatprep.subr.bf16.mxu1 %v1956_v36  ;;  %1831 = vmatpush3.bf16.msra.mxu0 %v1955_v34 }
 0x132   : > { %878 = vperm.xlu1 %1944, %v808_v32   ;;  %873 = vperm.xlu0 %1943, %v807_v33  }
 0x133   : > { %1832 = vmatprep.subr.bf16.mxu0 %v1957_v39 }
 0x134   : > { %1799 = vmatpush3.bf16.msra.mxu1 %v1956_v36 }
 0x135   : > { %1800 = vmatprep.subr.bf16.mxu1 %v1958_v40  ;;  %1833 = vmatpush3.bf16.msra.mxu0 %v1957_v39  ;;  %v785_v7 = vld [vmem:[#allocation2 + $0x30] sm:$0xff] }
 0x136   : > { %888 = vperm.xlu1 %1944, %v810_v37   ;;  %883 = vperm.xlu0 %1943, %v809_v38   ;;  %v793_v35 = vld [vmem:[#allocation2 + $0x70] sm:$0xff] }
 0x137   : > { %1834 = vmatprep.subr.bf16.mxu0 %v1959_v41  ;;  %v786_v6 = vld [vmem:[#allocation2 + $0x38] sm:$0xff] }
 0x138   : > { %1801 = vmatpush3.bf16.msra.mxu1 %v1958_v40  ;;  %v794_v34 = vld [vmem:[#allocation2 + $0x78] sm:$0xff] }
 0x139   : > { %1802 = vmatprep.subr.bf16.mxu1 %v1960_v42  ;;  %1835 = vmatpush3.bf16.msra.mxu0 %v1959_v41 }
 0x13c   : > { %1803 = vmatpush3.bf16.msra.mxu1 %v1960_v42  ;;  %1837 = vmatmul.mubr.bf16.vlgmr.msra.gmra.mrb[0].mxu0 %v1962_v43 }
 0x13d   : > { %1840 = vmatprep.mubr.bf16.mxu0 %v1963_v44 }
 0x144   : > { %1841 = vmatmul.mubr.bf16.gmra.mrb[4].mxu0 %v1964_v45 }
 0x145   : > { %1844 = vmatprep.mubr.bf16.mxu0 %v1965_v46 }
 0x14c   : > { %1845 = vmatmul.mubr.bf16.gmra.mrb[8].mxu0 %v1966_v47 }
 0x14d   : > { %1848 = vmatprep.mubr.bf16.mxu0 %v1967_v48 }
 0x154   : > { %1849 = vmatmul.mubr.bf16.gmra.mrb[12].mxu0 %v1968_v49 }
 0x199   : > { %v824_v50 = vpop.permute.xlu1 %823  ;;  %v814_v51 = vpop.permute.xlu0 %813 }
 0x19a   : > { %v893_v58 = vmul.f32 %v824_v50, %v781_v52  ;;  %v891_v59 = vmul.f32 %v814_v51, %v779_v53 }
 0x19d   : > { %v829_v56 = vpop.permute.xlu1 %828  ;;  %v819_v57 = vpop.permute.xlu0 %818 }
 0x19e   : > { %v894_v60 = vmul.f32 %v829_v56, %v782_v54  ;;  %v892_v61 = vmul.f32 %v819_v57, %v780_v55 }
 0x1a0   : > { %v940_v0 = vpack.c.bf16 %v894_v60, %v893_v58  ;;  %v939_v1 = vpack.c.bf16 %v892_v61, %v891_v59  ;;  %v2312_v59 = vld [vmem:[%s2363_s6] ss:$0 sm:$0xff] }
 0x1a1   : > { %v839_v2 = vpop.permute.xlu1 %838  ;;  %v834_v3 = vpop.permute.xlu0 %833 }
 0x1a2   : > { %v896_v4 = vmul.f32 %v839_v2, %v784_v62  ;;  %v895_v5 = vmul.f32 %v834_v3, %v783_v63  ;;  %1804 = vmatprep.mubr.bf16.mxu1 %v939_v1 }
 0x1a3   : > { %1805 = vmatmul.mubr.bf16.vlgmr.msra.gmra.mrb[0].mxu1 %v940_v0 }
 0x1a4   : > { %v941_v8 = vpack.c.bf16 %v896_v4, %v895_v5 }
 0x1a5   : > { %v849_v9 = vpop.permute.xlu1 %848  ;;  %v844_v10 = vpop.permute.xlu0 %843 }
 0x1a6   : > { %v898_v11 = vmul.f32 %v849_v9, %v786_v6  ;;  %v897_v12 = vmul.f32 %v844_v10, %v785_v7  ;;  %1808 = vmatprep.mubr.bf16.mxu1 %v941_v8 }
 0x1a8   : > { %v942_v15 = vpack.c.bf16 %v898_v11, %v897_v12 }
 0x1a9   : > { %v859_v16 = vpop.permute.xlu1 %858  ;;  %v854_v17 = vpop.permute.xlu0 %853 }
 0x1aa   : > { %v900_v18 = vmul.f32 %v859_v16, %v788_v13  ;;  %v899_v19 = vmul.f32 %v854_v17, %v787_v14 }
 0x1ab   : > { %1809 = vmatmul.mubr.bf16.gmra.mrb[4].mxu1 %v942_v15 }
 0x1ac   : > { %v943_v22 = vpack.c.bf16 %v900_v18, %v899_v19 }
 0x1ad   : > { %v869_v23 = vpop.permute.xlu1 %868  ;;  %v864_v24 = vpop.permute.xlu0 %863 }
 0x1ae   : > { %v902_v25 = vmul.f32 %v869_v23, %v790_v20  ;;  %v901_v26 = vmul.f32 %v864_v24, %v789_v21  ;;  %1812 = vmatprep.mubr.bf16.mxu1 %v943_v22 }
 0x1b0   : > { %v944_v29 = vpack.c.bf16 %v902_v25, %v901_v26 }
 0x1b1   : > { %v879_v30 = vpop.permute.xlu1 %878  ;;  %v874_v31 = vpop.permute.xlu0 %873 }
 0x1b2   : > { %v904_v32 = vmul.f32 %v879_v30, %v792_v27  ;;  %v903_v33 = vmul.f32 %v874_v31, %v791_v28 }
 0x1b3   : > { %1813 = vmatmul.mubr.bf16.gmra.mrb[8].mxu1 %v944_v29 }
 0x1b4   : > { %v945_v36 = vpack.c.bf16 %v904_v32, %v903_v33 }
 0x1b5   : > { %v889_v37 = vpop.permute.xlu1 %888  ;;  %v884_v38 = vpop.permute.xlu0 %883 }
 0x1b6   : > { %v906_v39 = vmul.f32 %v889_v37, %v794_v34  ;;  %v905_v40 = vmul.f32 %v884_v38, %v793_v35  ;;  %1816 = vmatprep.mubr.bf16.mxu1 %v945_v36 }
 0x1b8   : > { %v946_v41 = vpack.c.bf16 %v906_v39, %v905_v40 }
 0x1bb   : > { %1817 = vmatmul.mubr.bf16.gmra.mrb[12].mxu1 %v946_v41 }
 0x20f   : > { %v1838_v42 = vpop.f32.mrb[0].mxu0 }
 0x210   : > { %v1238_v43 = vpop.f32.mrb[1].mxu0 }
 0x211   : > { %v1839_v44 = vpop.f32.mrb[2].mxu0 }
 0x212   : > { %v1241_v45 = vpop.f32.mrb[3].mxu0 }
 0x217   : > { %v1842_v46 = vpop.f32.mrb[4].mxu0 }
 0x218   : > { %v1254_v47 = vpop.f32.mrb[5].mxu0 }
 0x219   : > { %v1843_v48 = vpop.f32.mrb[6].mxu0 }
 0x21a   : > { %v1257_v49 = vpop.f32.mrb[7].mxu0 }
 0x21f   : > { %v1846_v50 = vpop.f32.mrb[8].mxu0 }
 0x220   : > { %v1270_v51 = vpop.f32.mrb[9].mxu0 }
 0x221   : > { %v1847_v52 = vpop.f32.mrb[10].mxu0 }
 0x222   : > { %v1273_v53 = vpop.f32.mrb[11].mxu0 }
 0x227   : > { %v2301_v54 = vpop.f32.mrb[12].mxu0 }
 0x228   : > { %v2303_v55 = vpop.f32.mrb[13].mxu0 }
 0x229   : > { %v2305_v56 = vpop.f32.mrb[14].mxu0 }
 0x22a   : > { %v2307_v57 = vpop.f32.mrb[15].mxu0 }
 0x276   : > { %v1806_v58 = vpop.f32.mrb[0].mxu1 }
 0x277   : > { %v1247_v60 = vadd.f32 %v1838_v42, %v1806_v58  ;;  %v1045_v61 = vpop.f32.mrb[1].mxu1 }
 0x278   : > { %v1239_v62 = vadd.f32 %v1238_v43, %v1045_v61  ;;  %v1807_v63 = vpop.f32.mrb[2].mxu1 }
 0x279   : > { %v1310_v0 = vadd.f32 %v2312_v59, %v1247_v60  ;;  %v1250_v1 = vadd.f32 %v1839_v44, %v1807_v63  ;;  %v1048_v2 = vpop.f32.mrb[3].mxu1 }
 0x27a   : > { %v1308_v3 = vadd.f32 %v2312_v59, %v1239_v62  ;;  %v1242_v4 = vadd.f32 %v1241_v45, %v1048_v2 }
 0x27b   : > { %v1311_v5 = vadd.f32 %v2312_v59, %v1250_v1  ;;  %v1326_v7 = vmax.f32 %v1310_v0, 0.0 }
 0x27c   : > { %v1309_v6 = vadd.f32 %v2312_v59, %v1242_v4  ;;  %v1324_v9 = vmax.f32 %v1308_v3, 0.0 }
 0x27d   : > { %v1327_v8 = vmax.f32 %v1311_v5, 0.0 }
 0x27e   : > { %v1325_v10 = vmax.f32 %v1309_v6, 0.0  ;;  %v1810_v11 = vpop.f32.mrb[4].mxu1 }
 0x27f   : > { %v1653_v12 = vpack.c.bf16 %v1327_v8, %v1326_v7  ;;  %v1263_v13 = vadd.f32 %v1842_v46, %v1810_v11  ;;  %v1061_v14 = vpop.f32.mrb[5].mxu1 }
 0x280   : > { %v1648_v15 = vpack.c.bf16 %v1325_v10, %v1324_v9  ;;  %v1255_v16 = vadd.f32 %v1254_v47, %v1061_v14  ;;  %v1811_v17 = vpop.f32.mrb[6].mxu1 }
 0x281   : > { %1685 = vst [vmem:[%s2113_s13 + $0x8] sm:$0xff] %v1653_v12   ;;  %v1314_v18 = vadd.f32 %v2312_v59, %v1263_v13  ;;  %v1266_v19 = vadd.f32 %v1843_v48, %v1811_v17  ;;  %v1064_v20 = vpop.f32.mrb[7].mxu1 }
 0x282   : > { %1649 = vst [vmem:[%s2113_s13] sm:$0xff] %v1648_v15   ;;  %v1312_v21 = vadd.f32 %v2312_v59, %v1255_v16  ;;  %v1258_v22 = vadd.f32 %v1257_v49, %v1064_v20 }
 0x283   : > { %v1315_v23 = vadd.f32 %v2312_v59, %v1266_v19  ;;  %v1330_v25 = vmax.f32 %v1314_v18, 0.0 }
 0x284   : > { %v1313_v24 = vadd.f32 %v2312_v59, %v1258_v22  ;;  %v1328_v27 = vmax.f32 %v1312_v21, 0.0 }
 0x285   : > { %v1331_v26 = vmax.f32 %v1315_v23, 0.0 }
 0x286   : > { %v1329_v28 = vmax.f32 %v1313_v24, 0.0  ;;  %v1814_v29 = vpop.f32.mrb[8].mxu1 }
 0x287   : > { %v1663_v30 = vpack.c.bf16 %v1331_v26, %v1330_v25  ;;  %v1279_v31 = vadd.f32 %v1846_v50, %v1814_v29  ;;  %v1077_v32 = vpop.f32.mrb[9].mxu1 }
 0x288   : > { %v1658_v33 = vpack.c.bf16 %v1329_v28, %v1328_v27  ;;  %v1271_v34 = vadd.f32 %v1270_v51, %v1077_v32  ;;  %v1815_v35 = vpop.f32.mrb[10].mxu1 }
 0x289   : > { %1687 = vst [vmem:[%s2113_s13 + $0x18] sm:$0xff] %v1663_v30   ;;  %v1318_v36 = vadd.f32 %v2312_v59, %v1279_v31  ;;  %v1282_v37 = vadd.f32 %v1847_v52, %v1815_v35  ;;  %v1080_v38 = vpop.f32.mrb[11].mxu1 }
 0x28a   : > { %1686 = vst [vmem:[%s2113_s13 + $0x10] sm:$0xff] %v1658_v33   ;;  %v1316_v39 = vadd.f32 %v2312_v59, %v1271_v34  ;;  %v1274_v40 = vadd.f32 %v1273_v53, %v1080_v38 }
 0x28b   : > { %v1319_v41 = vadd.f32 %v2312_v59, %v1282_v37  ;;  %v1334_v43 = vmax.f32 %v1318_v36, 0.0 }
 0x28c   : > { %v1317_v42 = vadd.f32 %v2312_v59, %v1274_v40  ;;  %v1332_v45 = vmax.f32 %v1316_v39, 0.0 }
 0x28d   : > { %v1335_v44 = vmax.f32 %v1319_v41, 0.0 }
 0x28e   : > { %v1333_v46 = vmax.f32 %v1317_v42, 0.0  ;;  %v1818_v47 = vpop.f32.mrb[12].mxu1 }
 0x28f   : > { %v1673_v48 = vpack.c.bf16 %v1335_v44, %v1334_v43  ;;  %v1295_v49 = vadd.f32 %v2301_v54, %v1818_v47  ;;  %v1093_v50 = vpop.f32.mrb[13].mxu1 }
 0x290   : > { %v1668_v51 = vpack.c.bf16 %v1333_v46, %v1332_v45  ;;  %v1287_v52 = vadd.f32 %v2303_v55, %v1093_v50  ;;  %v1819_v58 = vpop.f32.mrb[14].mxu1 }
 0x291   : > { %1689 = vst [vmem:[%s2113_s13 + $0x28] sm:$0xff] %v1673_v48   ;;  %v1322_v53 = vadd.f32 %v2312_v59, %v1295_v49  ;;  %v1298_v60 = vadd.f32 %v2305_v56, %v1819_v58  ;;  %v1096_v61 = vpop.f32.mrb[15].mxu1 }
 0x292   : > { %1688 = vst [vmem:[%s2113_s13 + $0x20] sm:$0xff] %v1668_v51   ;;  %v1320_v62 = vadd.f32 %v2312_v59, %v1287_v52  ;;  %v1290_v63 = vadd.f32 %v2307_v57, %v1096_v61 }
 0x293   : > { %v1323_v54 = vadd.f32 %v2312_v59, %v1298_v60  ;;  %v1338_v1 = vmax.f32 %v1322_v53, 0.0 }
 0x294   : > { %v1321_v0 = vadd.f32 %v2312_v59, %v1290_v63  ;;  %v1336_v2 = vmax.f32 %v1320_v62, 0.0 }
 0x295   : > { %v1339_v55 = vmax.f32 %v1323_v54, 0.0 }
 0x296   : > { %v1337_v3 = vmax.f32 %v1321_v0, 0.0 }
 0x297   : > { %v1683_v4 = vpack.c.bf16 %v1339_v55, %v1338_v1 }
 0x298   : > { %v1678_v5 = vpack.c.bf16 %v1337_v3, %v1336_v2 }
 0x299   : > { %1691 = vst [vmem:[%s2113_s13 + $0x38] sm:$0xff] %v1683_v4  }
 0x29a   : > { %1690 = vst [vmem:[%s2113_s13 + $0x30] sm:$0xff] %v1678_v5  }
 0x29b PF: > { %s17_s28 = sadd.s32 1, %s2007_s28   ;;  %s2367_s8 = sld [smem:[#allocation3_spill]] }
 0x29c   : > { %p14_p10 = scmp.ge.s32.totalorder %s17_s28, 10   ;;  %s2368_s24 = smov %s1999_s26 }
 0x29d   : > { %s2369_s25 = smov %s2003_s27  ;;  %s2370_s26 = smov %s2373_s29 }
 0x29e   :  { %16 = sbr.rel (!%p14_p10) target bundleno = 3 (0x3), region = 95 }
 0x2a1   : > { %s2371_s27 = smov %s2367_s8 }

</bundles_post_ra>
